<compile_context>
chip_gen: v5e
topology: v5e:2x2
jax: 0.10.0
libtpu: 0.0.40
codegen_flags: <defaults>
</compile_context>

<pallas_src>
import jax
import jax.numpy as jnp
from jax.experimental import pallas as pl
from jax.experimental.pallas import tpu as pltpu


# ----------------------------- Pallas kernel ------------------------------- #
def teacher_gnn_kernel(adj_ref, feat_t_ref,        # (Np,Np), (Np,S)
                       u_ref, c_ref,               # (1,3*Hp) fused input weight / const
                       wh_ref, bhn_ref,            # (Hp,3*Hp), (1,Hp)
                       wc_ref, bc_ref,             # (Hp,Op), (1,Op)
                       out_ref,                    # (Np,Op)
                       gi_scr):                    # VMEM scratch (S,Np,3*Hp)
    Np = adj_ref.shape[0]
    S = feat_t_ref.shape[1]
    Hp = wh_ref.shape[0]
    G = 3 * Hp

    def dot(a, b):
        return jnp.dot(a, b, preferred_element_type=jnp.float32)

    # ------------------ prologue (off the serial critical path) -------------
    # GCN aggregation for all timesteps at once: agg[:, t] = adj @ f_t.
    agg = dot(adj_ref[...], feat_t_ref[...])                  # (Np, S)

    # Input-side gate term for every timestep, staged once in VMEM scratch.
    # Broadcasts are hoisted (JAX does not CSE broadcast_in_dim).
    u_b = jnp.broadcast_to(u_ref[...], (Np, G))
    c_b = jnp.broadcast_to(c_ref[...], (Np, G))
    for t in range(S):                                        # prologue only
        gi_scr[t] = agg[:, t:t + 1] * u_b + c_b

    # Recurrence-invariant operands, loaded / broadcast exactly once.
    wh = wh_ref[...]                                          # (Hp, 3*Hp)
    bhn_b = jnp.broadcast_to(bhn_ref[...], (Np, Hp))          # (Np, Hp)

    # ------------- GRU recurrence (PyTorch gate order r, z, n) --------------
    def step(t, h):
        gi = gi_scr[t]                                        # (Np, 3*Hp)
        gh = dot(h, wh)                                       # (Np, 3*Hp) one wide matmul
        # r and z share one fused sigmoid over the contiguous first 2*Hp lanes.
        rz = jax.nn.sigmoid(gi[:, :2 * Hp] + gh[:, :2 * Hp])
        r = rz[:, :Hp]
        z = rz[:, Hp:]
        n = jnp.tanh(gi[:, 2 * Hp:] + r * (gh[:, 2 * Hp:] + bhn_b))
        return (1.0 - z) * n + z * h

    h0 = jnp.zeros((Np, Hp), jnp.float32)
    h = jax.lax.fori_loop(0, S, step, h0, unroll=True)

    # --------------- classifier on last hidden state (lane-dense store) -----
    out_ref[...] = dot(h, wc_ref[...]) + bc_ref[...]


# ------------------------------ wrapper ------------------------------------ #
def _round_up(x, m):
    return (x + m - 1) // m * m


def teacher_gnn_forward(features, adj, params):
    seq_len, N = features.shape
    Hg = params["w_hr"].shape[0]
    Od = params["w_c"].shape[1]

    Np = _round_up(N, 8)          # sublane-aligned node dim
    Hp = _round_up(Hg, 128)       # lane-aligned per-gate block
    Op = _round_up(Od, 128)       # lane-dense output store

    f32 = jnp.float32

    # ---- node-dim padding (padded rows are inert, sliced off at the end) ----
    feat_t = jnp.pad(features.T.astype(f32), ((0, Np - N), (0, 0)))      # (Np, S)
    adj_p = jnp.pad(adj.astype(f32), ((0, Np - N), (0, Np - N)))         # (Np, Np)

    # ---- fuse + pad GRU weights: each gate block occupies Hp=128 lanes ----
    def pad_cols(w):                       # (..., Hg) -> (..., Hp)
        return jnp.pad(w.astype(f32), ((0, 0), (0, Hp - Hg)))

    def pad_rec(w):                        # (Hg, Hg) -> (Hp, Hp)
        return jnp.pad(w.astype(f32), ((0, Hp - Hg), (0, Hp - Hg)))

    wi = jnp.concatenate([pad_cols(params["w_ir"]),
                          pad_cols(params["w_iz"]),
                          pad_cols(params["w_in"])], axis=1)             # (hidden, 3*Hp)
    # b_hr / b_hz fold into the constant term (they are outside the r-gating);
    # b_hn must stay inside r * (.) so it is passed separately.
    bi = jnp.concatenate([pad_cols(params["b_ir"] + params["b_hr"]),
                          pad_cols(params["b_iz"] + params["b_hz"]),
                          pad_cols(params["b_in"])], axis=1)             # (1, 3*Hp)
    wh = jnp.concatenate([pad_rec(params["w_hr"]),
                          pad_rec(params["w_hz"]),
                          pad_rec(params["w_hn"])], axis=1)              # (Hp, 3*Hp)
    bhn = pad_cols(params["b_hn"])                                       # (1, Hp)

    # ---- fold the GCN Linear into the fused input projection (exact for
    #      input_dim == 1):  x_t @ W_i + b_i == a_t*(w_gcn@W_i) + (b_gcn@W_i+b_i)
    u = params["w_gcn"].astype(f32) @ wi                                 # (1, 3*Hp)
    c = params["b_gcn"].astype(f32) @ wi + bi                            # (1, 3*Hp)

    wc = jnp.pad(params["w_c"].astype(f32), ((0, Hp - Hg), (0, Op - Od)))  # (Hp, Op)
    bc = jnp.pad(params["b_c"].astype(f32), ((0, 0), (0, Op - Od)))        # (1, Op)

    args = [adj_p, feat_t, u, c, wh, bhn, wc, bc]
    vmem_spec = pl.BlockSpec(memory_space=pltpu.MemorySpace.VMEM)

    out_padded = pl.pallas_call(
        teacher_gnn_kernel,
        out_shape=jax.ShapeDtypeStruct((Np, Op), f32),
        in_specs=[vmem_spec] * len(args),                    # grid-less: whole arrays in VMEM
        out_specs=vmem_spec,
        scratch_shapes=[pltpu.VMEM((seq_len, Np, 3 * Hp), f32)],
    )(*args)

    return out_padded[:N, :Od]


# --------------------- deterministic parameter init ------------------------ #
def init_params(key, input_dim, hidden_dim, gru_hidden_dim, output_dim):
    # The module's forward only type-checks when input_dim == 1 (h is (N, 1)).
    assert input_dim == 1
    ks = jax.random.split(key, 16)

    def rn(k, shape, scale=0.2):
        return (scale * jax.random.normal(k, shape)).astype(jnp.float32)

    p = {
        # nn.Linear(1, hidden_dim): weight stored transposed as (1, hidden)
        "w_gcn": rn(ks[0], (1, hidden_dim)),
        "b_gcn": rn(ks[1], (1, hidden_dim)),
        # GRU input weights (hidden_dim, Hg), PyTorch gate order r, z, n
        "w_ir": rn(ks[2], (hidden_dim, gru_hidden_dim)),
        "w_iz": rn(ks[3], (hidden_dim, gru_hidden_dim)),
        "w_in": rn(ks[4], (hidden_dim, gru_hidden_dim)),
        # GRU recurrent weights (Hg, Hg)
        "w_hr": rn(ks[5], (gru_hidden_dim, gru_hidden_dim)),
        "w_hz": rn(ks[6], (gru_hidden_dim, gru_hidden_dim)),
        "w_hn": rn(ks[7], (gru_hidden_dim, gru_hidden_dim)),
        "b_ir": rn(ks[8], (1, gru_hidden_dim)),
        "b_iz": rn(ks[9], (1, gru_hidden_dim)),
        "b_in": rn(ks[10], (1, gru_hidden_dim)),
        "b_hr": rn(ks[11], (1, gru_hidden_dim)),
        "b_hz": rn(ks[12], (1, gru_hidden_dim)),
        "b_hn": rn(ks[13], (1, gru_hidden_dim)),
        # classifier (Hg, output_dim)
        "w_c": rn(ks[14], (gru_hidden_dim, output_dim)),
        "b_c": rn(ks[15], (1, output_dim)),
    }
    return p


# --------------------------- pure-JAX reference ----------------------------- #
def reference_forward(features, adj, p):
    seq_len, N = features.shape
    gru_hidden_dim = p["w_hr"].shape[0]
    a = jnp.einsum("ij,tj->ti", adj, features)              # (seq, N): adj @ f_t per t
    xs = a[..., None] * p["w_gcn"] + p["b_gcn"]             # (seq, N, hidden)

    def step(h, xt):
        r = jax.nn.sigmoid(xt @ p["w_ir"] + p["b_ir"] + h @ p["w_hr"] + p["b_hr"])
        z = jax.nn.sigmoid(xt @ p["w_iz"] + p["b_iz"] + h @ p["w_hz"] + p["b_hz"])
        n = jnp.tanh(xt @ p["w_in"] + p["b_in"] + r * (h @ p["w_hn"] + p["b_hn"]))
        h_new = (1.0 - z) * n + z * h
        return h_new, None

    h0 = jnp.zeros((N, gru_hidden_dim), jnp.float32)
    h_last, _ = jax.lax.scan(step, h0, xs)
    return h_last @ p["w_c"] + p["b_c"]


# --------------------------------- main ------------------------------------ #
if __name__ == "__main__":
    seq_len, N = 8, 16
    input_dim, hidden_dim, gru_hidden_dim, output_dim = 1, 32, 32, 8

    key = jax.random.PRNGKey(0)
    kf, ka, kp = jax.random.split(key, 3)

    features = jax.random.normal(kf, (seq_len, N), dtype=jnp.float32)
    adj = (jax.random.uniform(ka, (N, N)) < 0.3).astype(jnp.float32)
    adj = jnp.minimum(adj + jnp.eye(N, dtype=jnp.float32), 1.0)   # self loops

    params = init_params(kp, input_dim, hidden_dim, gru_hidden_dim, output_dim)

    out = teacher_gnn_forward(features, adj, params)
    out = jax.block_until_ready(out)

    ref = reference_forward(features, adj, params)
    assert out.shape == (N, output_dim)
    assert bool(jnp.allclose(out, ref, rtol=1e-3, atol=1e-3)), "mismatch vs JAX reference"

    print("KERNEL_OK")
</pallas_src>

<mosaic_0001>
module attributes {stable_mosaic.version = 11 : i64} {
  func.func @teacher_gnn_kernel(%arg0: memref<16x16xf32, #tpu.memory_space<vmem>>, %arg1: memref<16x8xf32, #tpu.memory_space<vmem>>, %arg2: memref<1x384xf32, #tpu.memory_space<vmem>>, %arg3: memref<1x384xf32, #tpu.memory_space<vmem>>, %arg4: memref<128x384xf32, #tpu.memory_space<vmem>>, %arg5: memref<1x128xf32, #tpu.memory_space<vmem>>, %arg6: memref<128x128xf32, #tpu.memory_space<vmem>>, %arg7: memref<1x128xf32, #tpu.memory_space<vmem>>, %arg8: memref<16x128xf32, #tpu.memory_space<vmem>>, %arg9: memref<8x16x384xf32, #tpu.memory_space<vmem>>) attributes {dimension_semantics = [], scalar_prefetch = 0 : i64, scratch_operands = 1 : i64, tpu.core_type = #tpu.core_type<tc>} {
    %c0 = arith.constant 0 : index
    %c0_0 = arith.constant 0 : index
    %0 = vector.load %arg0[%c0, %c0_0] : memref<16x16xf32, #tpu.memory_space<vmem>>, vector<16x16xf32>
    %c0_1 = arith.constant 0 : index
    %c0_2 = arith.constant 0 : index
    %1 = vector.load %arg1[%c0_1, %c0_2] : memref<16x8xf32, #tpu.memory_space<vmem>>, vector<16x8xf32>
    %cst = arith.constant dense<0.000000e+00> : vector<16x8xf32>
    %2 = tpu.matmul %0, %1, %cst {dimension_numbers = #tpu.dot_dimension_numbers<[1], [0], [0], [1], [0, 0, 1, 1], [], []>} : vector<16x16xf32>, vector<16x8xf32>, vector<16x8xf32> -> vector<16x8xf32>
    %c0_3 = arith.constant 0 : index
    %c0_4 = arith.constant 0 : index
    %3 = vector.load %arg2[%c0_3, %c0_4] : memref<1x384xf32, #tpu.memory_space<vmem>>, vector<1x384xf32>
    %4 = vector.shape_cast %3 : vector<1x384xf32> to vector<1x384xf32>
    %5 = vector.broadcast %4 : vector<1x384xf32> to vector<16x384xf32>
    %c0_5 = arith.constant 0 : index
    %c0_6 = arith.constant 0 : index
    %6 = vector.load %arg3[%c0_5, %c0_6] : memref<1x384xf32, #tpu.memory_space<vmem>>, vector<1x384xf32>
    %7 = vector.shape_cast %6 : vector<1x384xf32> to vector<1x384xf32>
    %8 = vector.broadcast %7 : vector<1x384xf32> to vector<16x384xf32>
    %9 = vector.extract_strided_slice %2 {offsets = [0, 0], sizes = [16, 1], strides = [1, 1]} : vector<16x8xf32> to vector<16x1xf32>
    %10 = vector.broadcast %9 : vector<16x1xf32> to vector<16x384xf32>
    %11 = arith.mulf %10, %5 : vector<16x384xf32>
    %12 = arith.addf %11, %8 : vector<16x384xf32>
    %c0_7 = arith.constant 0 : index
    %c0_8 = arith.constant 0 : index
    %c0_9 = arith.constant 0 : index
    %13 = vector.load %arg9[%c0_7, %c0_8, %c0_9] : memref<8x16x384xf32, #tpu.memory_space<vmem>>, vector<1x16x384xf32>
    %14 = vector.shape_cast %13 : vector<1x16x384xf32> to vector<16x384xf32>
    %15 = vector.shape_cast %12 : vector<16x384xf32> to vector<1x16x384xf32>
    tpu.vector_store %arg9[%c0_7, %c0_8, %c0_9], %15 {strides = array<i32>} : memref<8x16x384xf32, #tpu.memory_space<vmem>>, vector<1x16x384xf32>,
    %16 = vector.extract_strided_slice %2 {offsets = [0, 1], sizes = [16, 1], strides = [1, 1]} : vector<16x8xf32> to vector<16x1xf32>
    %17 = vector.broadcast %16 : vector<16x1xf32> to vector<16x384xf32>
    %18 = arith.mulf %17, %5 : vector<16x384xf32>
    %19 = arith.addf %18, %8 : vector<16x384xf32>
    %c1 = arith.constant 1 : index
    %c0_10 = arith.constant 0 : index
    %c0_11 = arith.constant 0 : index
    %20 = vector.load %arg9[%c1, %c0_10, %c0_11] : memref<8x16x384xf32, #tpu.memory_space<vmem>>, vector<1x16x384xf32>
    %21 = vector.shape_cast %20 : vector<1x16x384xf32> to vector<16x384xf32>
    %22 = vector.shape_cast %19 : vector<16x384xf32> to vector<1x16x384xf32>
    tpu.vector_store %arg9[%c1, %c0_10, %c0_11], %22 {strides = array<i32>} : memref<8x16x384xf32, #tpu.memory_space<vmem>>, vector<1x16x384xf32>,
    %23 = vector.extract_strided_slice %2 {offsets = [0, 2], sizes = [16, 1], strides = [1, 1]} : vector<16x8xf32> to vector<16x1xf32>
    %24 = vector.broadcast %23 : vector<16x1xf32> to vector<16x384xf32>
    %25 = arith.mulf %24, %5 : vector<16x384xf32>
    %26 = arith.addf %25, %8 : vector<16x384xf32>
    %c2 = arith.constant 2 : index
    %c0_12 = arith.constant 0 : index
    %c0_13 = arith.constant 0 : index
    %27 = vector.load %arg9[%c2, %c0_12, %c0_13] : memref<8x16x384xf32, #tpu.memory_space<vmem>>, vector<1x16x384xf32>
    %28 = vector.shape_cast %27 : vector<1x16x384xf32> to vector<16x384xf32>
    %29 = vector.shape_cast %26 : vector<16x384xf32> to vector<1x16x384xf32>
    tpu.vector_store %arg9[%c2, %c0_12, %c0_13], %29 {strides = array<i32>} : memref<8x16x384xf32, #tpu.memory_space<vmem>>, vector<1x16x384xf32>,
    %30 = vector.extract_strided_slice %2 {offsets = [0, 3], sizes = [16, 1], strides = [1, 1]} : vector<16x8xf32> to vector<16x1xf32>
    %31 = vector.broadcast %30 : vector<16x1xf32> to vector<16x384xf32>
    %32 = arith.mulf %31, %5 : vector<16x384xf32>
    %33 = arith.addf %32, %8 : vector<16x384xf32>
    %c3 = arith.constant 3 : index
    %c0_14 = arith.constant 0 : index
    %c0_15 = arith.constant 0 : index
    %34 = vector.load %arg9[%c3, %c0_14, %c0_15] : memref<8x16x384xf32, #tpu.memory_space<vmem>>, vector<1x16x384xf32>
    %35 = vector.shape_cast %34 : vector<1x16x384xf32> to vector<16x384xf32>
    %36 = vector.shape_cast %33 : vector<16x384xf32> to vector<1x16x384xf32>
    tpu.vector_store %arg9[%c3, %c0_14, %c0_15], %36 {strides = array<i32>} : memref<8x16x384xf32, #tpu.memory_space<vmem>>, vector<1x16x384xf32>,
    %37 = vector.extract_strided_slice %2 {offsets = [0, 4], sizes = [16, 1], strides = [1, 1]} : vector<16x8xf32> to vector<16x1xf32>
    %38 = vector.broadcast %37 : vector<16x1xf32> to vector<16x384xf32>
    %39 = arith.mulf %38, %5 : vector<16x384xf32>
    %40 = arith.addf %39, %8 : vector<16x384xf32>
    %c4 = arith.constant 4 : index
    %c0_16 = arith.constant 0 : index
    %c0_17 = arith.constant 0 : index
    %41 = vector.load %arg9[%c4, %c0_16, %c0_17] : memref<8x16x384xf32, #tpu.memory_space<vmem>>, vector<1x16x384xf32>
    %42 = vector.shape_cast %41 : vector<1x16x384xf32> to vector<16x384xf32>
    %43 = vector.shape_cast %40 : vector<16x384xf32> to vector<1x16x384xf32>
    tpu.vector_store %arg9[%c4, %c0_16, %c0_17], %43 {strides = array<i32>} : memref<8x16x384xf32, #tpu.memory_space<vmem>>, vector<1x16x384xf32>,
    %44 = vector.extract_strided_slice %2 {offsets = [0, 5], sizes = [16, 1], strides = [1, 1]} : vector<16x8xf32> to vector<16x1xf32>
    %45 = vector.broadcast %44 : vector<16x1xf32> to vector<16x384xf32>
    %46 = arith.mulf %45, %5 : vector<16x384xf32>
    %47 = arith.addf %46, %8 : vector<16x384xf32>
    %c5 = arith.constant 5 : index
    %c0_18 = arith.constant 0 : index
    %c0_19 = arith.constant 0 : index
    %48 = vector.load %arg9[%c5, %c0_18, %c0_19] : memref<8x16x384xf32, #tpu.memory_space<vmem>>, vector<1x16x384xf32>
    %49 = vector.shape_cast %48 : vector<1x16x384xf32> to vector<16x384xf32>
    %50 = vector.shape_cast %47 : vector<16x384xf32> to vector<1x16x384xf32>
    tpu.vector_store %arg9[%c5, %c0_18, %c0_19], %50 {strides = array<i32>} : memref<8x16x384xf32, #tpu.memory_space<vmem>>, vector<1x16x384xf32>,
    %51 = vector.extract_strided_slice %2 {offsets = [0, 6], sizes = [16, 1], strides = [1, 1]} : vector<16x8xf32> to vector<16x1xf32>
    %52 = vector.broadcast %51 : vector<16x1xf32> to vector<16x384xf32>
    %53 = arith.mulf %52, %5 : vector<16x384xf32>
    %54 = arith.addf %53, %8 : vector<16x384xf32>
    %c6 = arith.constant 6 : index
    %c0_20 = arith.constant 0 : index
    %c0_21 = arith.constant 0 : index
    %55 = vector.load %arg9[%c6, %c0_20, %c0_21] : memref<8x16x384xf32, #tpu.memory_space<vmem>>, vector<1x16x384xf32>
    %56 = vector.shape_cast %55 : vector<1x16x384xf32> to vector<16x384xf32>
    %57 = vector.shape_cast %54 : vector<16x384xf32> to vector<1x16x384xf32>
    tpu.vector_store %arg9[%c6, %c0_20, %c0_21], %57 {strides = array<i32>} : memref<8x16x384xf32, #tpu.memory_space<vmem>>, vector<1x16x384xf32>,
    %58 = vector.extract_strided_slice %2 {offsets = [0, 7], sizes = [16, 1], strides = [1, 1]} : vector<16x8xf32> to vector<16x1xf32>
    %59 = vector.broadcast %58 : vector<16x1xf32> to vector<16x384xf32>
    %60 = arith.mulf %59, %5 : vector<16x384xf32>
    %61 = arith.addf %60, %8 : vector<16x384xf32>
    %c7 = arith.constant 7 : index
    %c0_22 = arith.constant 0 : index
    %c0_23 = arith.constant 0 : index
    %62 = vector.load %arg9[%c7, %c0_22, %c0_23] : memref<8x16x384xf32, #tpu.memory_space<vmem>>, vector<1x16x384xf32>
    %63 = vector.shape_cast %62 : vector<1x16x384xf32> to vector<16x384xf32>
    %64 = vector.shape_cast %61 : vector<16x384xf32> to vector<1x16x384xf32>
    tpu.vector_store %arg9[%c7, %c0_22, %c0_23], %64 {strides = array<i32>} : memref<8x16x384xf32, #tpu.memory_space<vmem>>, vector<1x16x384xf32>,
    %c0_24 = arith.constant 0 : index
    %c0_25 = arith.constant 0 : index
    %65 = vector.load %arg4[%c0_24, %c0_25] : memref<128x384xf32, #tpu.memory_space<vmem>>, vector<128x384xf32>
    %c0_26 = arith.constant 0 : index
    %c0_27 = arith.constant 0 : index
    %66 = vector.load %arg5[%c0_26, %c0_27] : memref<1x128xf32, #tpu.memory_space<vmem>>, vector<1x128xf32>
    %67 = vector.shape_cast %66 : vector<1x128xf32> to vector<1x128xf32>
    %68 = vector.broadcast %67 : vector<1x128xf32> to vector<16x128xf32>
    %cst_28 = arith.constant 0.000000e+00 : f32
    %69 = vector.broadcast %cst_28 : f32 to vector<16x128xf32>
    %c0_i32 = arith.constant 0 : i32
    %70 = arith.index_cast %c0_i32 : i32 to index
    %c0_29 = arith.constant 0 : index
    %c0_30 = arith.constant 0 : index
    %71 = vector.load %arg9[%70, %c0_29, %c0_30] : memref<8x16x384xf32, #tpu.memory_space<vmem>>, vector<1x16x384xf32>
    %72 = vector.shape_cast %71 : vector<1x16x384xf32> to vector<16x384xf32>
    %cst_31 = arith.constant dense<0.000000e+00> : vector<16x384xf32>
    %73 = tpu.matmul %69, %65, %cst_31 {dimension_numbers = #tpu.dot_dimension_numbers<[1], [0], [0], [1], [0, 0, 1, 1], [], []>} : vector<16x128xf32>, vector<128x384xf32>, vector<16x384xf32> -> vector<16x384xf32>
    %74 = vector.extract_strided_slice %72 {offsets = [0, 0], sizes = [16, 256], strides = [1, 1]} : vector<16x384xf32> to vector<16x256xf32>
    %75 = vector.extract_strided_slice %73 {offsets = [0, 0], sizes = [16, 256], strides = [1, 1]} : vector<16x384xf32> to vector<16x256xf32>
    %76 = arith.addf %74, %75 : vector<16x256xf32>
    %77 = arith.negf %76 : vector<16x256xf32>
    %78 = math.exp %77 : vector<16x256xf32>
    %cst_32 = arith.constant 1.000000e+00 : f32
    %79 = vector.broadcast %cst_32 : f32 to vector<16x256xf32>
    %80 = arith.addf %79, %78 : vector<16x256xf32>
    %81 = arith.divf %79, %80 : vector<16x256xf32>
    %82 = vector.extract_strided_slice %81 {offsets = [0, 0], sizes = [16, 128], strides = [1, 1]} : vector<16x256xf32> to vector<16x128xf32>
    %83 = vector.extract_strided_slice %81 {offsets = [0, 128], sizes = [16, 128], strides = [1, 1]} : vector<16x256xf32> to vector<16x128xf32>
    %84 = vector.extract_strided_slice %72 {offsets = [0, 256], sizes = [16, 128], strides = [1, 1]} : vector<16x384xf32> to vector<16x128xf32>
    %85 = vector.extract_strided_slice %73 {offsets = [0, 256], sizes = [16, 128], strides = [1, 1]} : vector<16x384xf32> to vector<16x128xf32>
    %86 = arith.addf %85, %68 : vector<16x128xf32>
    %87 = arith.mulf %82, %86 : vector<16x128xf32>
    %88 = arith.addf %84, %87 : vector<16x128xf32>
    %89 = math.tanh %88 : vector<16x128xf32>
    %cst_33 = arith.constant 1.000000e+00 : f32
    %90 = vector.broadcast %cst_33 : f32 to vector<16x128xf32>
    %91 = arith.subf %90, %83 : vector<16x128xf32>
    %92 = arith.mulf %91, %89 : vector<16x128xf32>
    %93 = arith.mulf %83, %69 : vector<16x128xf32>
    %94 = arith.addf %92, %93 : vector<16x128xf32>
    %c1_i32 = arith.constant 1 : i32
    %95 = arith.index_cast %c1_i32 : i32 to index
    %c0_34 = arith.constant 0 : index
    %c0_35 = arith.constant 0 : index
    %96 = vector.load %arg9[%95, %c0_34, %c0_35] : memref<8x16x384xf32, #tpu.memory_space<vmem>>, vector<1x16x384xf32>
    %97 = vector.shape_cast %96 : vector<1x16x384xf32> to vector<16x384xf32>
    %cst_36 = arith.constant dense<0.000000e+00> : vector<16x384xf32>
    %98 = tpu.matmul %94, %65, %cst_36 {dimension_numbers = #tpu.dot_dimension_numbers<[1], [0], [0], [1], [0, 0, 1, 1], [], []>} : vector<16x128xf32>, vector<128x384xf32>, vector<16x384xf32> -> vector<16x384xf32>
    %99 = vector.extract_strided_slice %97 {offsets = [0, 0], sizes = [16, 256], strides = [1, 1]} : vector<16x384xf32> to vector<16x256xf32>
    %100 = vector.extract_strided_slice %98 {offsets = [0, 0], sizes = [16, 256], strides = [1, 1]} : vector<16x384xf32> to vector<16x256xf32>
    %101 = arith.addf %99, %100 : vector<16x256xf32>
    %102 = arith.negf %101 : vector<16x256xf32>
    %103 = math.exp %102 : vector<16x256xf32>
    %cst_37 = arith.constant 1.000000e+00 : f32
    %104 = vector.broadcast %cst_37 : f32 to vector<16x256xf32>
    %105 = arith.addf %104, %103 : vector<16x256xf32>
    %106 = arith.divf %104, %105 : vector<16x256xf32>
    %107 = vector.extract_strided_slice %106 {offsets = [0, 0], sizes = [16, 128], strides = [1, 1]} : vector<16x256xf32> to vector<16x128xf32>
    %108 = vector.extract_strided_slice %106 {offsets = [0, 128], sizes = [16, 128], strides = [1, 1]} : vector<16x256xf32> to vector<16x128xf32>
    %109 = vector.extract_strided_slice %97 {offsets = [0, 256], sizes = [16, 128], strides = [1, 1]} : vector<16x384xf32> to vector<16x128xf32>
    %110 = vector.extract_strided_slice %98 {offsets = [0, 256], sizes = [16, 128], strides = [1, 1]} : vector<16x384xf32> to vector<16x128xf32>
    %111 = arith.addf %110, %68 : vector<16x128xf32>
    %112 = arith.mulf %107, %111 : vector<16x128xf32>
    %113 = arith.addf %109, %112 : vector<16x128xf32>
    %114 = math.tanh %113 : vector<16x128xf32>
    %cst_38 = arith.constant 1.000000e+00 : f32
    %115 = vector.broadcast %cst_38 : f32 to vector<16x128xf32>
    %116 = arith.subf %115, %108 : vector<16x128xf32>
    %117 = arith.mulf %116, %114 : vector<16x128xf32>
    %118 = arith.mulf %108, %94 : vector<16x128xf32>
    %119 = arith.addf %117, %118 : vector<16x128xf32>
    %c2_i32 = arith.constant 2 : i32
    %120 = arith.index_cast %c2_i32 : i32 to index
    %c0_39 = arith.constant 0 : index
    %c0_40 = arith.constant 0 : index
    %121 = vector.load %arg9[%120, %c0_39, %c0_40] : memref<8x16x384xf32, #tpu.memory_space<vmem>>, vector<1x16x384xf32>
    %122 = vector.shape_cast %121 : vector<1x16x384xf32> to vector<16x384xf32>
    %cst_41 = arith.constant dense<0.000000e+00> : vector<16x384xf32>
    %123 = tpu.matmul %119, %65, %cst_41 {dimension_numbers = #tpu.dot_dimension_numbers<[1], [0], [0], [1], [0, 0, 1, 1], [], []>} : vector<16x128xf32>, vector<128x384xf32>, vector<16x384xf32> -> vector<16x384xf32>
    %124 = vector.extract_strided_slice %122 {offsets = [0, 0], sizes = [16, 256], strides = [1, 1]} : vector<16x384xf32> to vector<16x256xf32>
    %125 = vector.extract_strided_slice %123 {offsets = [0, 0], sizes = [16, 256], strides = [1, 1]} : vector<16x384xf32> to vector<16x256xf32>
    %126 = arith.addf %124, %125 : vector<16x256xf32>
    %127 = arith.negf %126 : vector<16x256xf32>
    %128 = math.exp %127 : vector<16x256xf32>
    %cst_42 = arith.constant 1.000000e+00 : f32
    %129 = vector.broadcast %cst_42 : f32 to vector<16x256xf32>
    %130 = arith.addf %129, %128 : vector<16x256xf32>
    %131 = arith.divf %129, %130 : vector<16x256xf32>
    %132 = vector.extract_strided_slice %131 {offsets = [0, 0], sizes = [16, 128], strides = [1, 1]} : vector<16x256xf32> to vector<16x128xf32>
    %133 = vector.extract_strided_slice %131 {offsets = [0, 128], sizes = [16, 128], strides = [1, 1]} : vector<16x256xf32> to vector<16x128xf32>
    %134 = vector.extract_strided_slice %122 {offsets = [0, 256], sizes = [16, 128], strides = [1, 1]} : vector<16x384xf32> to vector<16x128xf32>
    %135 = vector.extract_strided_slice %123 {offsets = [0, 256], sizes = [16, 128], strides = [1, 1]} : vector<16x384xf32> to vector<16x128xf32>
    %136 = arith.addf %135, %68 : vector<16x128xf32>
    %137 = arith.mulf %132, %136 : vector<16x128xf32>
    %138 = arith.addf %134, %137 : vector<16x128xf32>
    %139 = math.tanh %138 : vector<16x128xf32>
    %cst_43 = arith.constant 1.000000e+00 : f32
    %140 = vector.broadcast %cst_43 : f32 to vector<16x128xf32>
    %141 = arith.subf %140, %133 : vector<16x128xf32>
    %142 = arith.mulf %141, %139 : vector<16x128xf32>
    %143 = arith.mulf %133, %119 : vector<16x128xf32>
    %144 = arith.addf %142, %143 : vector<16x128xf32>
    %c3_i32 = arith.constant 3 : i32
    %145 = arith.index_cast %c3_i32 : i32 to index
    %c0_44 = arith.constant 0 : index
    %c0_45 = arith.constant 0 : index
    %146 = vector.load %arg9[%145, %c0_44, %c0_45] : memref<8x16x384xf32, #tpu.memory_space<vmem>>, vector<1x16x384xf32>
    %147 = vector.shape_cast %146 : vector<1x16x384xf32> to vector<16x384xf32>
    %cst_46 = arith.constant dense<0.000000e+00> : vector<16x384xf32>
    %148 = tpu.matmul %144, %65, %cst_46 {dimension_numbers = #tpu.dot_dimension_numbers<[1], [0], [0], [1], [0, 0, 1, 1], [], []>} : vector<16x128xf32>, vector<128x384xf32>, vector<16x384xf32> -> vector<16x384xf32>
    %149 = vector.extract_strided_slice %147 {offsets = [0, 0], sizes = [16, 256], strides = [1, 1]} : vector<16x384xf32> to vector<16x256xf32>
    %150 = vector.extract_strided_slice %148 {offsets = [0, 0], sizes = [16, 256], strides = [1, 1]} : vector<16x384xf32> to vector<16x256xf32>
    %151 = arith.addf %149, %150 : vector<16x256xf32>
    %152 = arith.negf %151 : vector<16x256xf32>
    %153 = math.exp %152 : vector<16x256xf32>
    %cst_47 = arith.constant 1.000000e+00 : f32
    %154 = vector.broadcast %cst_47 : f32 to vector<16x256xf32>
    %155 = arith.addf %154, %153 : vector<16x256xf32>
    %156 = arith.divf %154, %155 : vector<16x256xf32>
    %157 = vector.extract_strided_slice %156 {offsets = [0, 0], sizes = [16, 128], strides = [1, 1]} : vector<16x256xf32> to vector<16x128xf32>
    %158 = vector.extract_strided_slice %156 {offsets = [0, 128], sizes = [16, 128], strides = [1, 1]} : vector<16x256xf32> to vector<16x128xf32>
    %159 = vector.extract_strided_slice %147 {offsets = [0, 256], sizes = [16, 128], strides = [1, 1]} : vector<16x384xf32> to vector<16x128xf32>
    %160 = vector.extract_strided_slice %148 {offsets = [0, 256], sizes = [16, 128], strides = [1, 1]} : vector<16x384xf32> to vector<16x128xf32>
    %161 = arith.addf %160, %68 : vector<16x128xf32>
    %162 = arith.mulf %157, %161 : vector<16x128xf32>
    %163 = arith.addf %159, %162 : vector<16x128xf32>
    %164 = math.tanh %163 : vector<16x128xf32>
    %cst_48 = arith.constant 1.000000e+00 : f32
    %165 = vector.broadcast %cst_48 : f32 to vector<16x128xf32>
    %166 = arith.subf %165, %158 : vector<16x128xf32>
    %167 = arith.mulf %166, %164 : vector<16x128xf32>
    %168 = arith.mulf %158, %144 : vector<16x128xf32>
    %169 = arith.addf %167, %168 : vector<16x128xf32>
    %c4_i32 = arith.constant 4 : i32
    %170 = arith.index_cast %c4_i32 : i32 to index
    %c0_49 = arith.constant 0 : index
    %c0_50 = arith.constant 0 : index
    %171 = vector.load %arg9[%170, %c0_49, %c0_50] : memref<8x16x384xf32, #tpu.memory_space<vmem>>, vector<1x16x384xf32>
    %172 = vector.shape_cast %171 : vector<1x16x384xf32> to vector<16x384xf32>
    %cst_51 = arith.constant dense<0.000000e+00> : vector<16x384xf32>
    %173 = tpu.matmul %169, %65, %cst_51 {dimension_numbers = #tpu.dot_dimension_numbers<[1], [0], [0], [1], [0, 0, 1, 1], [], []>} : vector<16x128xf32>, vector<128x384xf32>, vector<16x384xf32> -> vector<16x384xf32>
    %174 = vector.extract_strided_slice %172 {offsets = [0, 0], sizes = [16, 256], strides = [1, 1]} : vector<16x384xf32> to vector<16x256xf32>
    %175 = vector.extract_strided_slice %173 {offsets = [0, 0], sizes = [16, 256], strides = [1, 1]} : vector<16x384xf32> to vector<16x256xf32>
    %176 = arith.addf %174, %175 : vector<16x256xf32>
    %177 = arith.negf %176 : vector<16x256xf32>
    %178 = math.exp %177 : vector<16x256xf32>
    %cst_52 = arith.constant 1.000000e+00 : f32
    %179 = vector.broadcast %cst_52 : f32 to vector<16x256xf32>
    %180 = arith.addf %179, %178 : vector<16x256xf32>
    %181 = arith.divf %179, %180 : vector<16x256xf32>
    %182 = vector.extract_strided_slice %181 {offsets = [0, 0], sizes = [16, 128], strides = [1, 1]} : vector<16x256xf32> to vector<16x128xf32>
    %183 = vector.extract_strided_slice %181 {offsets = [0, 128], sizes = [16, 128], strides = [1, 1]} : vector<16x256xf32> to vector<16x128xf32>
    %184 = vector.extract_strided_slice %172 {offsets = [0, 256], sizes = [16, 128], strides = [1, 1]} : vector<16x384xf32> to vector<16x128xf32>
    %185 = vector.extract_strided_slice %173 {offsets = [0, 256], sizes = [16, 128], strides = [1, 1]} : vector<16x384xf32> to vector<16x128xf32>
    %186 = arith.addf %185, %68 : vector<16x128xf32>
    %187 = arith.mulf %182, %186 : vector<16x128xf32>
    %188 = arith.addf %184, %187 : vector<16x128xf32>
    %189 = math.tanh %188 : vector<16x128xf32>
    %cst_53 = arith.constant 1.000000e+00 : f32
    %190 = vector.broadcast %cst_53 : f32 to vector<16x128xf32>
    %191 = arith.subf %190, %183 : vector<16x128xf32>
    %192 = arith.mulf %191, %189 : vector<16x128xf32>
    %193 = arith.mulf %183, %169 : vector<16x128xf32>
    %194 = arith.addf %192, %193 : vector<16x128xf32>
    %c5_i32 = arith.constant 5 : i32
    %195 = arith.index_cast %c5_i32 : i32 to index
    %c0_54 = arith.constant 0 : index
    %c0_55 = arith.constant 0 : index
    %196 = vector.load %arg9[%195, %c0_54, %c0_55] : memref<8x16x384xf32, #tpu.memory_space<vmem>>, vector<1x16x384xf32>
    %197 = vector.shape_cast %196 : vector<1x16x384xf32> to vector<16x384xf32>
    %cst_56 = arith.constant dense<0.000000e+00> : vector<16x384xf32>
    %198 = tpu.matmul %194, %65, %cst_56 {dimension_numbers = #tpu.dot_dimension_numbers<[1], [0], [0], [1], [0, 0, 1, 1], [], []>} : vector<16x128xf32>, vector<128x384xf32>, vector<16x384xf32> -> vector<16x384xf32>
    %199 = vector.extract_strided_slice %197 {offsets = [0, 0], sizes = [16, 256], strides = [1, 1]} : vector<16x384xf32> to vector<16x256xf32>
    %200 = vector.extract_strided_slice %198 {offsets = [0, 0], sizes = [16, 256], strides = [1, 1]} : vector<16x384xf32> to vector<16x256xf32>
    %201 = arith.addf %199, %200 : vector<16x256xf32>
    %202 = arith.negf %201 : vector<16x256xf32>
    %203 = math.exp %202 : vector<16x256xf32>
    %cst_57 = arith.constant 1.000000e+00 : f32
    %204 = vector.broadcast %cst_57 : f32 to vector<16x256xf32>
    %205 = arith.addf %204, %203 : vector<16x256xf32>
    %206 = arith.divf %204, %205 : vector<16x256xf32>
    %207 = vector.extract_strided_slice %206 {offsets = [0, 0], sizes = [16, 128], strides = [1, 1]} : vector<16x256xf32> to vector<16x128xf32>
    %208 = vector.extract_strided_slice %206 {offsets = [0, 128], sizes = [16, 128], strides = [1, 1]} : vector<16x256xf32> to vector<16x128xf32>
    %209 = vector.extract_strided_slice %197 {offsets = [0, 256], sizes = [16, 128], strides = [1, 1]} : vector<16x384xf32> to vector<16x128xf32>
    %210 = vector.extract_strided_slice %198 {offsets = [0, 256], sizes = [16, 128], strides = [1, 1]} : vector<16x384xf32> to vector<16x128xf32>
    %211 = arith.addf %210, %68 : vector<16x128xf32>
    %212 = arith.mulf %207, %211 : vector<16x128xf32>
    %213 = arith.addf %209, %212 : vector<16x128xf32>
    %214 = math.tanh %213 : vector<16x128xf32>
    %cst_58 = arith.constant 1.000000e+00 : f32
    %215 = vector.broadcast %cst_58 : f32 to vector<16x128xf32>
    %216 = arith.subf %215, %208 : vector<16x128xf32>
    %217 = arith.mulf %216, %214 : vector<16x128xf32>
    %218 = arith.mulf %208, %194 : vector<16x128xf32>
    %219 = arith.addf %217, %218 : vector<16x128xf32>
    %c6_i32 = arith.constant 6 : i32
    %220 = arith.index_cast %c6_i32 : i32 to index
    %c0_59 = arith.constant 0 : index
    %c0_60 = arith.constant 0 : index
    %221 = vector.load %arg9[%220, %c0_59, %c0_60] : memref<8x16x384xf32, #tpu.memory_space<vmem>>, vector<1x16x384xf32>
    %222 = vector.shape_cast %221 : vector<1x16x384xf32> to vector<16x384xf32>
    %cst_61 = arith.constant dense<0.000000e+00> : vector<16x384xf32>
    %223 = tpu.matmul %219, %65, %cst_61 {dimension_numbers = #tpu.dot_dimension_numbers<[1], [0], [0], [1], [0, 0, 1, 1], [], []>} : vector<16x128xf32>, vector<128x384xf32>, vector<16x384xf32> -> vector<16x384xf32>
    %224 = vector.extract_strided_slice %222 {offsets = [0, 0], sizes = [16, 256], strides = [1, 1]} : vector<16x384xf32> to vector<16x256xf32>
    %225 = vector.extract_strided_slice %223 {offsets = [0, 0], sizes = [16, 256], strides = [1, 1]} : vector<16x384xf32> to vector<16x256xf32>
    %226 = arith.addf %224, %225 : vector<16x256xf32>
    %227 = arith.negf %226 : vector<16x256xf32>
    %228 = math.exp %227 : vector<16x256xf32>
    %cst_62 = arith.constant 1.000000e+00 : f32
    %229 = vector.broadcast %cst_62 : f32 to vector<16x256xf32>
    %230 = arith.addf %229, %228 : vector<16x256xf32>
    %231 = arith.divf %229, %230 : vector<16x256xf32>
    %232 = vector.extract_strided_slice %231 {offsets = [0, 0], sizes = [16, 128], strides = [1, 1]} : vector<16x256xf32> to vector<16x128xf32>
    %233 = vector.extract_strided_slice %231 {offsets = [0, 128], sizes = [16, 128], strides = [1, 1]} : vector<16x256xf32> to vector<16x128xf32>
    %234 = vector.extract_strided_slice %222 {offsets = [0, 256], sizes = [16, 128], strides = [1, 1]} : vector<16x384xf32> to vector<16x128xf32>
    %235 = vector.extract_strided_slice %223 {offsets = [0, 256], sizes = [16, 128], strides = [1, 1]} : vector<16x384xf32> to vector<16x128xf32>
    %236 = arith.addf %235, %68 : vector<16x128xf32>
    %237 = arith.mulf %232, %236 : vector<16x128xf32>
    %238 = arith.addf %234, %237 : vector<16x128xf32>
    %239 = math.tanh %238 : vector<16x128xf32>
    %cst_63 = arith.constant 1.000000e+00 : f32
    %240 = vector.broadcast %cst_63 : f32 to vector<16x128xf32>
    %241 = arith.subf %240, %233 : vector<16x128xf32>
    %242 = arith.mulf %241, %239 : vector<16x128xf32>
    %243 = arith.mulf %233, %219 : vector<16x128xf32>
    %244 = arith.addf %242, %243 : vector<16x128xf32>
    %c7_i32 = arith.constant 7 : i32
    %245 = arith.index_cast %c7_i32 : i32 to index
    %c0_64 = arith.constant 0 : index
    %c0_65 = arith.constant 0 : index
    %246 = vector.load %arg9[%245, %c0_64, %c0_65] : memref<8x16x384xf32, #tpu.memory_space<vmem>>, vector<1x16x384xf32>
    %247 = vector.shape_cast %246 : vector<1x16x384xf32> to vector<16x384xf32>
    %cst_66 = arith.constant dense<0.000000e+00> : vector<16x384xf32>
    %248 = tpu.matmul %244, %65, %cst_66 {dimension_numbers = #tpu.dot_dimension_numbers<[1], [0], [0], [1], [0, 0, 1, 1], [], []>} : vector<16x128xf32>, vector<128x384xf32>, vector<16x384xf32> -> vector<16x384xf32>
    %249 = vector.extract_strided_slice %247 {offsets = [0, 0], sizes = [16, 256], strides = [1, 1]} : vector<16x384xf32> to vector<16x256xf32>
    %250 = vector.extract_strided_slice %248 {offsets = [0, 0], sizes = [16, 256], strides = [1, 1]} : vector<16x384xf32> to vector<16x256xf32>
    %251 = arith.addf %249, %250 : vector<16x256xf32>
    %252 = arith.negf %251 : vector<16x256xf32>
    %253 = math.exp %252 : vector<16x256xf32>
    %cst_67 = arith.constant 1.000000e+00 : f32
    %254 = vector.broadcast %cst_67 : f32 to vector<16x256xf32>
    %255 = arith.addf %254, %253 : vector<16x256xf32>
    %256 = arith.divf %254, %255 : vector<16x256xf32>
    %257 = vector.extract_strided_slice %256 {offsets = [0, 0], sizes = [16, 128], strides = [1, 1]} : vector<16x256xf32> to vector<16x128xf32>
    %258 = vector.extract_strided_slice %256 {offsets = [0, 128], sizes = [16, 128], strides = [1, 1]} : vector<16x256xf32> to vector<16x128xf32>
    %259 = vector.extract_strided_slice %247 {offsets = [0, 256], sizes = [16, 128], strides = [1, 1]} : vector<16x384xf32> to vector<16x128xf32>
    %260 = vector.extract_strided_slice %248 {offsets = [0, 256], sizes = [16, 128], strides = [1, 1]} : vector<16x384xf32> to vector<16x128xf32>
    %261 = arith.addf %260, %68 : vector<16x128xf32>
    %262 = arith.mulf %257, %261 : vector<16x128xf32>
    %263 = arith.addf %259, %262 : vector<16x128xf32>
    %264 = math.tanh %263 : vector<16x128xf32>
    %cst_68 = arith.constant 1.000000e+00 : f32
    %265 = vector.broadcast %cst_68 : f32 to vector<16x128xf32>
    %266 = arith.subf %265, %258 : vector<16x128xf32>
    %267 = arith.mulf %266, %264 : vector<16x128xf32>
    %268 = arith.mulf %258, %244 : vector<16x128xf32>
    %269 = arith.addf %267, %268 : vector<16x128xf32>
    %c8_i32 = arith.constant 8 : i32
    %c0_69 = arith.constant 0 : index
    %c0_70 = arith.constant 0 : index
    %270 = vector.load %arg6[%c0_69, %c0_70] : memref<128x128xf32, #tpu.memory_space<vmem>>, vector<128x128xf32>
    %cst_71 = arith.constant dense<0.000000e+00> : vector<16x128xf32>
    %271 = tpu.matmul %269, %270, %cst_71 {dimension_numbers = #tpu.dot_dimension_numbers<[1], [0], [0], [1], [0, 0, 1, 1], [], []>} : vector<16x128xf32>, vector<128x128xf32>, vector<16x128xf32> -> vector<16x128xf32>
    %c0_72 = arith.constant 0 : index
    %c0_73 = arith.constant 0 : index
    %272 = vector.load %arg7[%c0_72, %c0_73] : memref<1x128xf32, #tpu.memory_space<vmem>>, vector<1x128xf32>
    %273 = vector.broadcast %272 : vector<1x128xf32> to vector<16x128xf32>
    %274 = arith.addf %271, %273 : vector<16x128xf32>
    %c0_74 = arith.constant 0 : index
    %c0_75 = arith.constant 0 : index
    %275 = vector.load %arg8[%c0_74, %c0_75] : memref<16x128xf32, #tpu.memory_space<vmem>>, vector<16x128xf32>
    tpu.vector_store %arg8[%c0_74, %c0_75], %274 {strides = array<i32>} : memref<16x128xf32, #tpu.memory_space<vmem>>, vector<16x128xf32>,
    return
  }
}

</mosaic_0001>

<bundles_post_ra>
// kernel: tpu_custom_call.1
= control target key start
LH: loop header
LB: loop body
LE: loop exit
PB: predicated region body
PF: predicated region fallthrough
CT: control target
= control target key end

     0   :  { %13 = vsyncpa [#allocation4], 0  ;;  %s3284_s0 = inlined_call_operand.vmem [shape: f32[16,16], index: 0, kind: input, shape index: {}]   ;;  %s3285_s1 = inlined_call_operand.vmem [shape: f32[16,8], index: 1, kind: input, shape index: {}]   ;;  %s3286_s2 = inlined_call_operand.vmem [shape: f32[1,384], index: 2, kind: input, shape index: {}]   ;;  %s3287_s3 = inlined_call_operand.vmem [shape: f32[1,384], index: 3, kind: input, shape index: {}]   ;;  %s3288_s4 = inlined_call_operand.hbm [shape: f32[128,384], index: 4, kind: input, shape index: {}]   ;;  %s3289_s5 = inlined_call_operand.vmem [shape: f32[1,128], index: 5, kind: input, shape index: {}]   ;;  %s3290_s6 = inlined_call_operand.hbm [shape: f32[128,128], index: 6, kind: input, shape index: {}]   ;;  %s3291_s7 = inlined_call_operand.vmem [shape: f32[1,128], index: 7, kind: input, shape index: {}]   ;;  %s3292_s8 = inlined_call_operand.hbm [shape: f32[16,128], index: 8, kind: output, shape index: {}]  }
   0x1   :  { %14 = vsyncpa [#allocation7], 0 }
   0x2   :  { %15 = vsyncpa [#allocation5], 0  ;;  %s28_s29 = sshll.u32 %s3288_s4, 4  ;;  %s2187_s30 = smov [#allocation3]   ;;  %s29_s29 = int_to_ptr.hbm [resolvable:$true] %s28_s29 }
   0x3   :  { %s30_s9 = sshll.u32 %s2187_s30, 4  ;;  %s43_s12 = sshll.u32 %s3290_s6, 4  ;;  %s31_s9 = int_to_ptr.vmem [resolvable:$true] %s30_s9  ;;  %s44_s12 = int_to_ptr.hbm [resolvable:$true] %s43_s12 }
   0x4   :  { %s2188_s13 = smov 384   ;;  %s2189_s14 = smov 24  }
   0x5   :  { %36 = dma.hbm_to_vmem [thread:$0]  %s29_s29, 6144, %s31_s9, [#allocation4], %s2188_s13, %s2188_s13, %s2189_s14  }
   0x6   :  { %s2190_s15 = smov [#allocation6]   ;;  %s2191_s17 = smov 128  }
   0x7   :  { %s45_s16 = sshll.u32 %s2190_s15, 4  ;;  %s2192_s18 = smov 8   ;;  %s46_s16 = int_to_ptr.vmem [resolvable:$true] %s45_s16 }
   0x8   :  { %51 = dma.hbm_to_vmem [thread:$0]  %s44_s12, 2048, %s46_s16, [#allocation7], %s2191_s17, %s2191_s17, %s2192_s18  }
   0x9   :  { %2181 = dma.done.wait [#allocation4], 6144  }
   0xa   :  { %2182 = vsyncadd [#allocation4], 4294961152 }
   0xb   :  { %2183 = dma.done.wait [#allocation7], 2048  }
   0xc   :  { %2184 = vsyncadd [#allocation7], 4294965248  ;;  %v65_v0 = vld [vmem:[%s3285_s1 + $0x8] sm:$0xff]  ;;  %v64_v1 = vld [vmem:[%s3285_s1] sm:$0xff]  ;;  %vm66_vm0 = vcmask 130048   ;;  %v2193_v17 = vmov 2  }
   0xd   :  { %87 = vmatpush.msra.mxu0 %v65_v0  ;;  %v62_v2 = vld [vmem:[%s3284_s0] sm:$0xff]  ;;  %v2266_v3 = vld [vmem:[#allocation3 + $0x170] sm:$0xff]  ;;  %v2268_v4 = vld [vmem:[#allocation3 + $0x158] sm:$0xff]  ;;  %1882 = vset.pattern.permute.xlu2 %v2193_v17  ;;  %v2194_v25 = vmov 1   ;;  %v2195_v29 = vmov 0   ;;  %v2196_v47 = vmov 0.0  }
   0xe   :  { %410 = vmatpush.msra.mxu2 %v2266_v3  ;;  %v2271_v5 = vld [vmem:[#allocation3 + $0x168] sm:$0xff]  ;;  %v2273_v6 = vld [vmem:[#allocation3 + $0x140] sm:$0xff]  ;;  %v2276_v7 = vld [vmem:[#allocation3 + $0x150] sm:$0xff]  ;;  %1881 = vset.pattern.permute.xlu1 %v2194_v25  ;;  %v2197_v58 = vmov 4   ;;  %v2198_v59 = vmov 3   ;;  %v2199_v60 = vmov 5  }
   0xf   :  { %88 = vmatpush.msra.mxu0 %v64_v1  ;;  %387 = vmatpush.msra.mxu1 %v2271_v5  ;;  %v2280_v8 = vld [vmem:[#allocation3 + $0x138] sm:$0xff]  ;;  %v2282_v9 = vld [vmem:[#allocation3 + $0x128] sm:$0xff]  ;;  %v2287_v10 = vld [vmem:[#allocation3 + $0x120] sm:$0xff]  ;;  %v2200_v61 = vmov 6   ;;  %v2201_v62 = vmov 7   ;;  %s2202_s10 = smov [#allocation8]  }
  0x10   :  { %1814 = vmatmul.msk.f32.vlgmr.msra.gmra.mxu0 %vm66_vm0, %v62_v2  ;;  %411 = vmatpush.msra.mxu2 %v2268_v4  ;;  %v2289_v11 = vld [vmem:[#allocation3 + $0x110] sm:$0xff]  ;;  %v2294_v12 = vld [vmem:[#allocation3 + $0x108] sm:$0xff]  ;;  %v2299_v14 = vld [vmem:[#allocation3 + $0xf8] sm:$0xff]  ;;  %s1798_s11 = sshll.u32 %s2202_s10, 4  ;;  %s1800_s14 = sshll.u32 %s3292_s8, 4  ;;  %s1799_s11 = int_to_ptr.vmem [resolvable:$true] %s1798_s11  ;;  %s1801_s14 = int_to_ptr.hbm [resolvable:$true] %s1800_s14 }
  0x11   :  { %388 = vmatpush.msra.mxu1 %v2276_v7  ;;  %558 = vmatpush.msrb.mxu0 %v2271_v5  ;;  %v63_v13 = vld [vmem:[%s3284_s0 + $0x8] sm:$0xff]  ;;  %v2304_v15 = vld [vmem:[#allocation3 + $0xf0] sm:$0xff]  ;;  %v2306_v16 = vld [vmem:[#allocation3 + $0x178] sm:$0xff] }
  0x12   :  { %412 = vmatpush.msra.mxu2 %v2273_v6  ;;  %v2308_v18 = vld [vmem:[#allocation3 + $0xe0] sm:$0xff]  ;;  %433 = vmatpush.msra.mxu3 %v2306_v16  ;;  %v2316_v20 = vld [vmem:[#allocation3 + $0xd8] sm:$0xff]  ;;  %v2318_v21 = vld [vmem:[#allocation3 + $0x148] sm:$0xff] }
  0x13   :  { %389 = vmatpush.msra.mxu1 %v2280_v8  ;;  %559 = vmatpush.msrb.mxu0 %v2276_v7  ;;  %v2312_v19 = vld [vmem:[#allocation3 + $0x160] sm:$0xff]  ;;  %v2320_v22 = vld [vmem:[#allocation3 + $0xc8] sm:$0xff]  ;;  %v2327_v24 = vld [vmem:[#allocation3 + $0x130] sm:$0xff] }
  0x14   :  { %413 = vmatpush.msra.mxu2 %v2282_v9  ;;  %434 = vmatpush.msra.mxu3 %v2312_v19  ;;  %v2325_v23 = vld [vmem:[#allocation3 + $0xc0] sm:$0xff]  ;;  %v2329_v26 = vld [vmem:[#allocation3 + $0xb0] sm:$0xff]  ;;  %v2334_v27 = vld [vmem:[#allocation3 + $0xa8] sm:$0xff] }
  0x15   :  { %390 = vmatpush.msra.mxu1 %v2287_v10  ;;  %560 = vmatpush.msrb.mxu0 %v2280_v8  ;;  %v2336_v28 = vld [vmem:[#allocation3 + $0x118] sm:$0xff]  ;;  %v2343_v31 = vld [vmem:[#allocation3 + $0x90] sm:$0xff]  ;;  %v2345_v32 = vld [vmem:[#allocation3 + $0x100] sm:$0xff] }
  0x16   :  { %414 = vmatpush.msra.mxu2 %v2289_v11  ;;  %435 = vmatpush.msra.mxu3 %v2318_v21  ;;  %v2338_v30 = vld [vmem:[#allocation3 + $0x98] sm:$0xff]  ;;  %v2348_v33 = vld [vmem:[#allocation3 + $0x80] sm:$0xff]  ;;  %v2355_v35 = vld [vmem:[#allocation3 + $0xe8] sm:$0xff] }
  0x17   :  { %391 = vmatpush.msra.mxu1 %v2294_v12  ;;  %1880 = vset.pattern.permute.xlu0 %v2195_v29  ;;  %3357 = vst [vmem:[#allocation12_spill] sm:$0xff] %v2348_v33  ;;  %v2353_v34 = vld [vmem:[#allocation3 + $0x78] sm:$0xff]  ;;  %v2358_v36 = vld [vmem:[#allocation3 + $0x68] sm:$0xff]  ;;  %v2363_v37 = vld [vmem:[#allocation3 + $0x60] sm:$0xff] }
  0x18   :  { %1815 = vmatmul.msk.f32.gmra.mxu0 %vm66_vm0, %v63_v13  ;;  %415 = vmatpush.msra.mxu2 %v2299_v14  ;;  %3358 = vst [vmem:[#allocation13_spill] sm:$0xff] %v2358_v36  ;;  %v2365_v38 = vld [vmem:[#allocation3 + $0xd0] sm:$0xff]  ;;  %v2373_v40 = vld [vmem:[#allocation3 + $0x48] sm:$0xff]  ;;  %v2376_v41 = vld [vmem:[#allocation3 + $0x38] sm:$0xff] }
  0x19   :  { %392 = vmatpush.msra.mxu1 %v2304_v15  ;;  %436 = vmatpush.msra.mxu3 %v2327_v24  ;;  %3359 = vst [vmem:[#allocation14_spill] sm:$0xff] %v2363_v37  ;;  %v2368_v39 = vld [vmem:[#allocation3 + $0x50] sm:$0xff]  ;;  %v2384_v43 = vld [vmem:[#allocation3 + $0x20] sm:$0xff]  ;;  %v2388_v44 = vld [vmem:[#allocation3 + $0x18] sm:$0xff] }
  0x1a   :  { %416 = vmatpush.msra.mxu2 %v2308_v18  ;;  %561 = vmatpush.msrb.mxu0 %v2287_v10  ;;  %3360 = vst [vmem:[#allocation15_spill] sm:$0xff] %v2368_v39  ;;  %v2381_v42 = vld [vmem:[#allocation3 + $0x30] sm:$0xff]  ;;  %v2391_v45 = vld [vmem:[#allocation3 + $0x8] sm:$0xff]  ;;  %v2395_v46 = vld [vmem:[#allocation3] sm:$0xff] }
  0x1b   :  { %393 = vmatpush.msra.mxu1 %v2316_v20  ;;  %437 = vmatpush.msra.mxu3 %v2336_v28  ;;  %3361 = vst [vmem:[#allocation16_spill] sm:$0xff] %v2373_v40  ;;  %v2459_v48 = vld [vmem:[#allocation3 + $0xb8] sm:$0xff]  ;;  %v2463_v49 = vld [vmem:[#allocation3 + $0xa0] sm:$0xff]  ;;  %v2465_v50 = vld [vmem:[#allocation3 + $0x88] sm:$0xff] }
  0x1c   :  { %417 = vmatpush.msra.mxu2 %v2320_v22  ;;  %562 = vmatpush.msrb.mxu0 %v2294_v12  ;;  %3362 = vst [vmem:[#allocation17_spill] sm:$0xff] %v2376_v41  ;;  %v2470_v51 = vld [vmem:[#allocation3 + $0x70] sm:$0xff]  ;;  %v2478_v52 = vld [vmem:[#allocation3 + $0x58] sm:$0xff]  ;;  %v2483_v53 = vld [vmem:[#allocation3 + $0x40] sm:$0xff] }
  0x1d   :  { %394 = vmatpush.msra.mxu1 %v2325_v23  ;;  %438 = vmatpush.msra.mxu3 %v2345_v32  ;;  %3363 = vst [vmem:[#allocation18_spill] sm:$0xff] %v2381_v42  ;;  %v2485_v54 = vld [vmem:[#allocation3 + $0x28] sm:$0xff]  ;;  %v2490_v55 = vld [vmem:[#allocation3 + $0x10] sm:$0xff]  ;;  %v96_v63 = vld [vmem:[%s3286_s2] sm:$0x7] }
  0x1e   :  { %418 = vmatpush.msra.mxu2 %v2329_v26  ;;  %563 = vmatpush.msrb.mxu0 %v2304_v15  ;;  %3364 = vst [vmem:[#allocation19_spill] sm:$0xff] %v2384_v43  ;;  %v2552_v0 = vperm.slane %v96_v63, 0  ;;  %v2554_v1 = vperm.slane %v96_v63, 1  ;;  %v104_v2 = vld [vmem:[%s3287_s3] sm:$0x7] }
  0x1f   :  { %395 = vmatpush.msra.mxu1 %v2334_v27  ;;  %439 = vmatpush.msra.mxu3 %v2355_v35  ;;  %3365 = vst [vmem:[#allocation20_spill] sm:$0xff] %v2388_v44 }
  0x20   :  { %419 = vmatpush.msra.mxu2 %v2338_v30  ;;  %564 = vmatpush.msrb.mxu0 %v2316_v20  ;;  %3366 = vst [vmem:[#allocation21_spill] sm:$0xff] %v2391_v45 }
  0x21   :  { %396 = vmatpush.msra.mxu1 %v2343_v31  ;;  %440 = vmatpush.msra.mxu3 %v2365_v38  ;;  %3367 = vst [vmem:[#allocation22_spill] sm:$0xff] %v2395_v46 }
  0x22   :  { %420 = vmatpush.msra.mxu2 %v2348_v33  ;;  %565 = vmatpush.msrb.mxu0 %v2325_v23  ;;  %3368 = vst [vmem:[#allocation23_spill] sm:$0xff] %v2478_v52 }
  0x23   :  { %397 = vmatpush.msra.mxu1 %v2353_v34  ;;  %441 = vmatpush.msra.mxu3 %v2459_v48  ;;  %3369 = vst [vmem:[#allocation24_spill] sm:$0xff] %v2483_v53 }
  0x24   :  { %421 = vmatpush.msra.mxu2 %v2358_v36  ;;  %566 = vmatpush.msrb.mxu0 %v2334_v27  ;;  %3370 = vst [vmem:[#allocation25_spill] sm:$0xff] %v2485_v54 }
  0x25   :  { %398 = vmatpush.msra.mxu1 %v2363_v37  ;;  %442 = vmatpush.msra.mxu3 %v2463_v49  ;;  %3371 = vst [vmem:[#allocation26_spill] sm:$0xff] %v2490_v55 }
  0x26   :  { %422 = vmatpush.msra.mxu2 %v2368_v39  ;;  %567 = vmatpush.msrb.mxu0 %v2343_v31  ;;  %3372 = vst [vmem:[#allocation27_spill] sm:$0xff] %v2552_v0 }
  0x27   :  { %399 = vmatpush.msra.mxu1 %v2373_v40  ;;  %443 = vmatpush.msra.mxu3 %v2465_v50  ;;  %3373 = vst [vmem:[#allocation28_spill] sm:$0xff] %v2554_v1 }
  0x28   :  { %423 = vmatpush.msra.mxu2 %v2376_v41  ;;  %568 = vmatpush.msrb.mxu0 %v2353_v34 }
  0x29   :  { %400 = vmatpush.msra.mxu1 %v2381_v42  ;;  %444 = vmatpush.msra.mxu3 %v2470_v51 }
  0x2a   :  { %424 = vmatpush.msra.mxu2 %v2384_v43  ;;  %569 = vmatpush.msrb.mxu0 %v2363_v37 }
  0x2b   :  { %401 = vmatpush.msra.mxu1 %v2388_v44  ;;  %445 = vmatpush.msra.mxu3 %v2478_v52 }
  0x2c   :  { %425 = vmatpush.msra.mxu2 %v2391_v45  ;;  %570 = vmatpush.msrb.mxu0 %v2373_v40 }
  0x2d   :  { %426 = vmatmul.f32.vlgmr.msra.gmra.mxu2 %v2196_v47  ;;  %402 = vmatpush.msra.mxu1 %v2395_v46 }
  0x2e   :  { %403 = vmatmul.f32.vlgmr.msra.gmra.mxu1 %v2196_v47  ;;  %604 = vmatpush.msrb.mxu2 %v2306_v16 }
  0x2f   :  { %581 = vmatpush.msrb.mxu1 %v2266_v3  ;;  %571 = vmatpush.msrb.mxu0 %v2381_v42 }
  0x30   :  { %605 = vmatpush.msrb.mxu2 %v2312_v19  ;;  %446 = vmatpush.msra.mxu3 %v2483_v53 }
  0x31   :  { %582 = vmatpush.msrb.mxu1 %v2268_v4  ;;  %572 = vmatpush.msrb.mxu0 %v2388_v44 }
  0x32   :  { %606 = vmatpush.msrb.mxu2 %v2318_v21  ;;  %447 = vmatpush.msra.mxu3 %v2485_v54 }
  0x33   :  { %583 = vmatpush.msrb.mxu1 %v2273_v6  ;;  %573 = vmatpush.msrb.mxu0 %v2395_v46 }
  0x34   :  { %607 = vmatpush.msrb.mxu2 %v2327_v24  ;;  %448 = vmatpush.msra.mxu3 %v2490_v55 }
  0x35   :  { %429 = vmatmul.f32.gmra.mxu2 %v2196_v47  ;;  %584 = vmatpush.msrb.mxu1 %v2282_v9 }
  0x36   :  { %406 = vmatmul.f32.gmra.mxu1 %v2196_v47  ;;  %608 = vmatpush.msrb.mxu2 %v2336_v28 }
  0x37   :  { %585 = vmatpush.msrb.mxu1 %v2289_v11  ;;  %752 = vmatpush.msra.mxu0 %v2266_v3 }
  0x38   :  { %609 = vmatpush.msrb.mxu2 %v2345_v32  ;;  %449 = vmatmul.f32.vlgmr.msra.gmra.mxu3 %v2196_v47 }
  0x39   :  { %586 = vmatpush.msrb.mxu1 %v2299_v14  ;;  %753 = vmatpush.msra.mxu0 %v2268_v4 }
  0x3a   :  { %610 = vmatpush.msrb.mxu2 %v2355_v35  ;;  %729 = vmatpush.msrb.mxu3 %v2271_v5 }
  0x3b   :  { %587 = vmatpush.msrb.mxu1 %v2308_v18  ;;  %754 = vmatpush.msra.mxu0 %v2273_v6 }
  0x3c   :  { %611 = vmatpush.msrb.mxu2 %v2365_v38  ;;  %730 = vmatpush.msrb.mxu3 %v2276_v7 }
  0x3d   :  { %588 = vmatpush.msrb.mxu1 %v2320_v22  ;;  %755 = vmatpush.msra.mxu0 %v2282_v9 }
  0x3e   :  { %612 = vmatpush.msrb.mxu2 %v2459_v48  ;;  %731 = vmatpush.msrb.mxu3 %v2280_v8 }
  0x3f   :  { %589 = vmatpush.msrb.mxu1 %v2329_v26  ;;  %756 = vmatpush.msra.mxu0 %v2289_v11 }
  0x40   :  { %613 = vmatpush.msrb.mxu2 %v2463_v49  ;;  %732 = vmatpush.msrb.mxu3 %v2287_v10 }
  0x41   :  { %590 = vmatpush.msrb.mxu1 %v2338_v30  ;;  %757 = vmatpush.msra.mxu0 %v2299_v14 }
  0x42   :  { %614 = vmatpush.msrb.mxu2 %v2465_v50  ;;  %452 = vmatmul.f32.gmra.mxu3 %v2196_v47 }
  0x43   :  { %591 = vmatpush.msrb.mxu1 %v2348_v33  ;;  %758 = vmatpush.msra.mxu0 %v2308_v18 }
  0x44   :  { %615 = vmatpush.msrb.mxu2 %v2470_v51  ;;  %733 = vmatpush.msrb.mxu3 %v2294_v12 }
  0x45   :  { %592 = vmatpush.msrb.mxu1 %v2358_v36  ;;  %759 = vmatpush.msra.mxu0 %v2320_v22 }
  0x46   :  { %616 = vmatpush.msrb.mxu2 %v2478_v52  ;;  %734 = vmatpush.msrb.mxu3 %v2304_v15 }
  0x47   :  { %593 = vmatpush.msrb.mxu1 %v2368_v39  ;;  %760 = vmatpush.msra.mxu0 %v2329_v26 }
  0x48   :  { %617 = vmatpush.msrb.mxu2 %v2483_v53  ;;  %735 = vmatpush.msrb.mxu3 %v2316_v20 }
  0x49   :  { %594 = vmatpush.msrb.mxu1 %v2376_v41  ;;  %761 = vmatpush.msra.mxu0 %v2338_v30 }
  0x4a   :  { %618 = vmatpush.msrb.mxu2 %v2485_v54  ;;  %736 = vmatpush.msrb.mxu3 %v2325_v23 }
  0x4b   :  { %595 = vmatpush.msrb.mxu1 %v2384_v43  ;;  %762 = vmatpush.msra.mxu0 %v2348_v33 }
  0x4c   :  { %619 = vmatpush.msrb.mxu2 %v2490_v55  ;;  %737 = vmatpush.msrb.mxu3 %v2334_v27 }
  0x4d   :  { %596 = vmatpush.msrb.mxu1 %v2391_v45  ;;  %763 = vmatpush.msra.mxu0 %v2358_v36 }
  0x4e   :  { %900 = vmatpush.msra.mxu2 %v2271_v5  ;;  %738 = vmatpush.msrb.mxu3 %v2343_v31 }
  0x4f   :  { %775 = vmatpush.msra.mxu1 %v2306_v16  ;;  %764 = vmatpush.msra.mxu0 %v2368_v39 }
  0x50   :  { %901 = vmatpush.msra.mxu2 %v2276_v7  ;;  %739 = vmatpush.msrb.mxu3 %v2353_v34 }
  0x51   :  { %776 = vmatpush.msra.mxu1 %v2312_v19  ;;  %765 = vmatpush.msra.mxu0 %v2376_v41 }
  0x52   :  { %902 = vmatpush.msra.mxu2 %v2280_v8  ;;  %740 = vmatpush.msrb.mxu3 %v2363_v37 }
  0x53   :  { %777 = vmatpush.msra.mxu1 %v2318_v21  ;;  %766 = vmatpush.msra.mxu0 %v2384_v43 }
  0x54   :  { %903 = vmatpush.msra.mxu2 %v2287_v10  ;;  %741 = vmatpush.msrb.mxu3 %v2373_v40 }
  0x55   :  { %778 = vmatpush.msra.mxu1 %v2327_v24  ;;  %767 = vmatpush.msra.mxu0 %v2391_v45 }
  0x56   :  { %904 = vmatpush.msra.mxu2 %v2294_v12  ;;  %742 = vmatpush.msrb.mxu3 %v2381_v42 }
  0x57   :  { %779 = vmatpush.msra.mxu1 %v2336_v28 }
  0x58   :  { %905 = vmatpush.msra.mxu2 %v2304_v15  ;;  %743 = vmatpush.msrb.mxu3 %v2388_v44 }
  0x59   :  { %780 = vmatpush.msra.mxu1 %v2345_v32 }
  0x5a   :  { %906 = vmatpush.msra.mxu2 %v2316_v20  ;;  %744 = vmatpush.msrb.mxu3 %v2395_v46 }
  0x5b   :  { %781 = vmatpush.msra.mxu1 %v2355_v35 }
  0x5c   :  { %907 = vmatpush.msra.mxu2 %v2325_v23  ;;  %923 = vmatpush.msra.mxu3 %v2266_v3 }
  0x5d   :  { %782 = vmatpush.msra.mxu1 %v2365_v38 }
  0x5e   :  { %908 = vmatpush.msra.mxu2 %v2334_v27  ;;  %924 = vmatpush.msra.mxu3 %v2268_v4 }
  0x5f   :  { %783 = vmatpush.msra.mxu1 %v2459_v48 }
  0x60   :  { %909 = vmatpush.msra.mxu2 %v2343_v31  ;;  %925 = vmatpush.msra.mxu3 %v2273_v6 }
  0x61   :  { %784 = vmatpush.msra.mxu1 %v2463_v49 }
  0x62   :  { %910 = vmatpush.msra.mxu2 %v2353_v34  ;;  %926 = vmatpush.msra.mxu3 %v2282_v9 }
  0x63   :  { %785 = vmatpush.msra.mxu1 %v2465_v50 }
  0x64   :  { %911 = vmatpush.msra.mxu2 %v2363_v37  ;;  %927 = vmatpush.msra.mxu3 %v2289_v11 }
  0x65   :  { %786 = vmatpush.msra.mxu1 %v2470_v51 }
  0x66   :  { %912 = vmatpush.msra.mxu2 %v2373_v40  ;;  %928 = vmatpush.msra.mxu3 %v2299_v14 }
  0x67   :  { %787 = vmatpush.msra.mxu1 %v2478_v52 }
  0x68   :  { %913 = vmatpush.msra.mxu2 %v2381_v42  ;;  %929 = vmatpush.msra.mxu3 %v2308_v18 }
  0x69   :  { %788 = vmatpush.msra.mxu1 %v2483_v53 }
  0x6a   :  { %914 = vmatpush.msra.mxu2 %v2388_v44  ;;  %930 = vmatpush.msra.mxu3 %v2320_v22 }
  0x6b   :  { %789 = vmatpush.msra.mxu1 %v2485_v54 }
  0x6c   :  { %915 = vmatpush.msra.mxu2 %v2395_v46  ;;  %931 = vmatpush.msra.mxu3 %v2329_v26 }
  0x6d   :  { %790 = vmatpush.msra.mxu1 %v2490_v55 }
  0x6e   :  { %932 = vmatpush.msra.mxu3 %v2338_v30 }
  0x70   :  { %933 = vmatpush.msra.mxu3 %v2348_v33 }
  0x72   :  { %934 = vmatpush.msra.mxu3 %v2358_v36 }
  0x74   :  { %935 = vmatpush.msra.mxu3 %v2368_v39 }
  0x76   :  { %936 = vmatpush.msra.mxu3 %v2376_v41 }
  0x78   :  { %937 = vmatpush.msra.mxu3 %v2384_v43 }
  0x7a   :  { %938 = vmatpush.msra.mxu3 %v2391_v45 }
  0x8d   :  { %v90_v56 = vpop.f32.mrf.mxu0 }
  0x8e   :  { %168 = vperm.xlu2 %1882, %v90_v56   ;;  %141 = vperm.xlu1 %1881, %v90_v56  }
  0x8f   :  { %114 = vperm.xlu0 %1880, %v90_v56  }
  0x95   :  { %v93_v57 = vpop.f32.mrf.mxu0 }
  0x96   :  { %172 = vperm.xlu2 %1882, %v93_v57   ;;  %145 = vperm.xlu1 %1881, %v93_v57  }
  0x97   :  { %119 = vperm.xlu0 %1880, %v93_v57  }
  0x9e   :  { %1885 = vset.pattern.permute.xlu2 %v2197_v58  ;;  %1884 = vset.pattern.permute.xlu1 %v2198_v59 }
  0x9f   :  { %1883 = vset.pattern.permute.xlu0 %v2198_v59  ;;  %222 = vperm.xlu2 %1885, %v90_v56  }
  0xa0   :  { %199 = vperm.xlu1 %1884, %v93_v57   ;;  %195 = vperm.xlu0 %1883, %v90_v56  }
  0xa7   :  { %1887 = vset.pattern.permute.xlu2 %v2199_v60 }
  0xa8   :  { %1886 = vset.pattern.permute.xlu1 %v2197_v58  ;;  %1888 = vset.pattern.permute.xlu0 %v2199_v60 }
  0xa9   :  { %249 = vperm.xlu2 %1887, %v90_v56   ;;  %226 = vperm.xlu1 %1886, %v93_v57  }
  0xaa   :  { %253 = vperm.xlu0 %1888, %v93_v57  }
  0xab   :  { %v404_v17 = vpop.f32.mrf.mxu1 }
  0xb0   :  { %v427_v47 = vpop.f32.mrf.mxu2 }
  0xb1   :  { %1890 = vset.pattern.permute.xlu2 %v2200_v61  ;;  %1889 = vset.pattern.permute.xlu1 %v2200_v61 }
  0xb2   :  { %280 = vperm.xlu2 %1890, %v93_v57   ;;  %276 = vperm.xlu1 %1889, %v90_v56  }
  0xb3   :  { %1893 = vset.pattern.permute.xlu0 %v2201_v62  ;;  %v407_v55 = vpop.f32.mrf.mxu1 }
  0xba   :  { %1892 = vset.pattern.permute.xlu2 %v2201_v62  ;;  %1891 = vset.pattern.permute.xlu1 %v2201_v62 }
  0xbb   :  { %303 = vperm.xlu2 %1892, %v90_v56   ;;  %307 = vperm.xlu1 %1891, %v93_v57   ;;  %v2561_v56 = vperm.slane %v104_v2, 0  ;;  %v2563_v57 = vperm.slane %v104_v2, 1 }
  0xbd   :  { %3374 = vst [vmem:[#allocation29_spill] sm:$0xff] %v2561_v56 }
  0xbe   :  { %3375 = vst [vmem:[#allocation30_spill] sm:$0xff] %v2563_v57 }
 0x101   :  { %v115_v13 = vpop.permute.xlu0 %114 }
 0x102   :  { %v122_v25 = vmul.f32 %v115_v13, %v2552_v0  ;;  %v123_v29 = vmul.f32 %v115_v13, %v2554_v1 }
 0x104   :  { %v128_v58 = vadd.f32 %v122_v25, %v2561_v56  ;;  %v129_v59 = vadd.f32 %v123_v29, %v2563_v57  ;;  %v430_v25 = vpop.f32.mrf.mxu2 }
 0x106   :  { %v456_v60 = vadd.f32 %v404_v17, %v128_v58  ;;  %v457_v61 = vadd.f32 %v427_v47, %v129_v59 }
 0x108   :  { %v1816_v62 = vmul.f32 -1.442695, %v456_v60  ;;  %v1817_v45 = vmul.f32 -1.442695, %v457_v61 }
 0x109   :  { %v2567_v46 = vpop.permute.xlu0 %119 }
 0x10a   :  { %v125_v43 = vmul.f32 %v2567_v46, %v2552_v0  ;;  %v126_v44 = vmul.f32 %v2567_v46, %v2554_v1  ;;  %1896 = vpow2.f32 %v1816_v62 }
 0x10b   :  { %1898 = vpow2.f32 %v1817_v45 }
 0x10c   :  { %v131_v41 = vadd.f32 %v125_v43, %v2561_v56  ;;  %v132_v29 = vadd.f32 %v126_v44, %v2563_v57  ;;  %v450_v44 = vpop.f32.mrf.mxu3  ;;  %v2593_v57 = vperm.slane %v104_v2, 2 }
 0x10e   :  { %v458_v17 = vadd.f32 %v407_v55, %v131_v41  ;;  %v459_v47 = vadd.f32 %v430_v25, %v132_v29  ;;  %v2585_v29 = vperm.slane %v96_v63, 2 }
 0x110   :  { %v1818_v58 = vmul.f32 -1.442695, %v458_v17  ;;  %v1897_v59 = vpop.eup %1896  ;;  %v1819_v60 = vmul.f32 -1.442695, %v459_v47  ;;  %v2590_v47 = vld [vmem:[%s3289_s5] ss:$0 sm:$0xff] }
 0x111   :  { %v1899_v61 = vpop.eup %1898  ;;  %v472_v42 = vadd.f32 1.0, %v1897_v59  ;;  %v124_v59 = vmul.f32 %v115_v13, %v2585_v29 }
 0x112   :  { %1900 = vpow2.f32 %v1818_v58  ;;  %v2575_v0 = vadd.f32 1.0, %v1899_v61 }
 0x113   :  { %1902 = vpow2.f32 %v1819_v60  ;;  %v487_v60 = vand.u32 2147483648, %v472_v42  ;;  %vm481_vm2 = vweird.f32 %v472_v42  ;;  %v130_v53 = vadd.f32 %v124_v59, %v2593_v57 }
 0x114   :  { %1904 = vrcp.f32 %v472_v42  ;;  %v453_v33 = vpop.f32.mrf.mxu3  ;;  %vm496_vm7 = vweird.f32 %v2575_v0 }
 0x115   :  { %1906 = vrcp.f32 %v2575_v0  ;;  %v488_v13 = vor.u32 1.1754944e-38, %v487_v60  ;;  %v127_v60 = vmul.f32 %v2567_v46, %v2585_v29 }
 0x118   :  { %v1901_v45 = vpop.eup %1900 }
 0x119   :  { %v1903_v62 = vpop.eup %1902  ;;  %v474_v43 = vadd.f32 1.0, %v1901_v45  ;;  %v485_v45 = vand.u32 2147483647, %v472_v42 }
 0x11a   :  { %v1905_v56 = vpop.eup %1904  ;;  %v2578_v1 = vadd.f32 1.0, %v1903_v62 }
 0x11b   :  { %v2580_v41 = vpop.eup %1906  ;;  %1908 = vrcp.f32 %v474_v43  ;;  %v477_v55 = vmul.f32 %v1905_v56, %v472_v42  ;;  %vm482_vm1 = vweird.f32 %v1905_v56  ;;  %vm486_vm4 = vcmp.eq.f32.partialorder %v485_v45, 8.507059e+37 }
 0x11c   :  { %v492_v25 = vmul.f32 %v2580_v41, %v2575_v0  ;;  %1910 = vrcp.f32 %v2578_v1  ;;  %vm483_vm3 = vmor %vm481_vm2, %vm482_vm1  ;;  %v517_v37 = vand.u32 2147483648, %v474_v43  ;;  %vm497_vm5 = vweird.f32 %v2580_v41 }
 0x11d   :  { %v478_v58 = vsub.f32 1.0, %v477_v55  ;;  %v515_v59 = vand.u32 2147483647, %v474_v43  ;;  %vm511_vm8 = vweird.f32 %v474_v43  ;;  %vm498_vm9 = vmor %vm496_vm7, %vm497_vm5  ;;  %vm526_vm14 = vweird.f32 %v2578_v1 }
 0x11e   :  { %v493_v17 = vsub.f32 1.0, %v492_v25  ;;  %v536_v25 = vadd.f32 %v2590_v47, %v450_v44 }
 0x11f   :  { %v479_v61 = vmul.f32 %v1905_v56, %v478_v58  ;;  %v502_v58 = vand.u32 2147483648, %v2575_v0  ;;  %vm516_vm11 = vcmp.eq.f32.partialorder %v515_v59, 8.507059e+37 }
 0x120   :  { %v494_v54 = vmul.f32 %v2580_v41, %v493_v17 }
 0x121   :  { %v1909_v62 = vpop.eup %1908  ;;  %v480_v39 = vadd.f32 %v1905_v56, %v479_v61 }
 0x122   :  { %v1911_v63 = vpop.eup %1910  ;;  %v507_v40 = vmul.f32 %v1909_v62, %v474_v43  ;;  %v495_v42 = vadd.f32 %v2580_v41, %v494_v54  ;;  %vm512_vm6 = vweird.f32 %v1909_v62  ;;  %v518_v54 = vor.u32 1.1754944e-38, %v517_v37 }
 0x123   :  { %v522_v55 = vmul.f32 %v1911_v63, %v2578_v1  ;;  %v484_v36 = vsel %vm483_vm3, %v1905_v56, %v480_v39  ;;  %vm513_vm10 = vmor %vm511_vm8, %vm512_vm6  ;;  %vm527_vm13 = vweird.f32 %v1911_v63  ;;  %v532_v43 = vand.u32 2147483648, %v2578_v1 }
 0x124   :  { %v508_v2 = vsub.f32 1.0, %v507_v40  ;;  %v489_v17 = vsel %vm486_vm4, %v488_v13, %v484_v36  ;;  %v500_v40 = vand.u32 2147483647, %v2575_v0  ;;  %v537_v36 = vadd.f32 %v2590_v47, %v453_v33  ;;  %vm528_vm15 = vmor %vm526_vm14, %vm527_vm13 }
 0x125   :  { %v523_v52 = vsub.f32 1.0, %v522_v55  ;;  %v538_v44 = vmul.f32 %v536_v25, %v489_v17  ;;  %v499_v25 = vsel %vm498_vm9, %v2580_v41, %v495_v42  ;;  %v503_v13 = vor.u32 1.1754944e-38, %v502_v58 }
 0x126   :  { %v509_v61 = vmul.f32 %v1909_v62, %v508_v2  ;;  %vm501_vm12 = vcmp.eq.f32.partialorder %v500_v40, 8.507059e+37  ;;  %v530_v33 = vand.u32 2147483647, %v2578_v1  ;;  %v533_v58 = vor.u32 1.1754944e-38, %v532_v43 }
 0x127   :  { %v524_v39 = vmul.f32 %v1911_v63, %v523_v52  ;;  %v540_v56 = vadd.f32 %v538_v44, %v130_v53  ;;  %v133_v52 = vadd.f32 %v127_v60, %v2593_v57  ;;  %v504_v0 = vsel %vm501_vm12, %v503_v13, %v499_v25 }
 0x128   :  { %v510_v45 = vadd.f32 %v1909_v62, %v509_v61  ;;  %v544_v41 = vsub.f32 1.0, %v504_v0  ;;  %v548_v44 = vmul.f32 0.0, %v504_v0  ;;  %vm531_vm0 = vcmp.eq.f32.partialorder %v530_v33, 8.507059e+37 }
 0x129   :  { %1912 = vtanh.f32 %v540_v56  ;;  %v525_v46 = vadd.f32 %v1911_v63, %v524_v39 }
 0x12a   :  { %v514_v55 = vsel %vm513_vm10, %v1909_v62, %v510_v45 }
 0x12b   :  { %v519_v2 = vsel %vm516_vm11, %v518_v54, %v514_v55  ;;  %v529_v62 = vsel %vm528_vm15, %v1911_v63, %v525_v46 }
 0x12c   :  { %v539_v53 = vmul.f32 %v537_v36, %v519_v2  ;;  %v534_v61 = vsel %vm531_vm0, %v533_v58, %v529_v62 }
 0x12d   :  { %v545_v60 = vsub.f32 1.0, %v534_v61  ;;  %v549_v63 = vmul.f32 0.0, %v534_v61 }
 0x12e   :  { %v541_v37 = vadd.f32 %v539_v53, %v133_v52 }
 0x12f   :  { %v1913_v17 = vpop.eup %1912 }
 0x130   :  { %1914 = vtanh.f32 %v541_v37  ;;  %v546_v42 = vmul.f32 %v1913_v17, %v544_v41 }
 0x132   :  { %v2612_v59 = vadd.f32 %v548_v44, %v546_v42 }
 0x134   :  { %574 = vmatmul.f32.vlgmr.msrb.gmra.mxu0 %v2612_v59  ;;  %597 = vmatmul.f32.vlgmr.msrb.gmra.mxu1 %v2612_v59 }
 0x135   :  { %620 = vmatmul.f32.vlgmr.msrb.gmra.mxu2 %v2612_v59  ;;  %946 = vmatpush.msrb.mxu0 %v2306_v16  ;;  %v3388_v16 = vld [vmem:[#allocation19_spill] sm:$0xff] }
 0x136   :  { %v1915_v39 = vpop.eup %1914  ;;  %1071 = vmatpush.msrb.mxu1 %v2271_v5  ;;  %1094 = vmatpush.msrb.mxu2 %v2266_v3  ;;  %v3376_v3 = vld [vmem:[#allocation12_spill] sm:$0xff]  ;;  %v3378_v5 = vld [vmem:[#allocation14_spill] sm:$0xff] }
 0x137   :  { %v547_v1 = vmul.f32 %v1915_v39, %v545_v60  ;;  %947 = vmatpush.msrb.mxu0 %v2312_v19  ;;  %v3390_v19 = vld [vmem:[#allocation21_spill] sm:$0xff] }
 0x138   :  { %1072 = vmatpush.msrb.mxu1 %v2276_v7  ;;  %1095 = vmatpush.msrb.mxu2 %v2268_v4  ;;  %v3377_v4 = vld [vmem:[#allocation23_spill] sm:$0xff]  ;;  %v3380_v7 = vld [vmem:[#allocation24_spill] sm:$0xff] }
 0x139   :  { %v2621_v40 = vadd.f32 %v549_v63, %v547_v1  ;;  %948 = vmatpush.msrb.mxu0 %v2318_v21  ;;  %v3391_v21 = vld [vmem:[#allocation27_spill] sm:$0xff] }
 0x13a   :  { %1073 = vmatpush.msrb.mxu1 %v2280_v8  ;;  %1096 = vmatpush.msrb.mxu2 %v2273_v6  ;;  %v3379_v6 = vld [vmem:[#allocation13_spill] sm:$0xff]  ;;  %v3381_v8 = vld [vmem:[#allocation16_spill] sm:$0xff] }
 0x13b   :  { %949 = vmatpush.msrb.mxu0 %v2327_v24 }
 0x13c   :  { %577 = vmatmul.f32.gmra.mxu0 %v2621_v40  ;;  %600 = vmatmul.f32.gmra.mxu1 %v2621_v40 }
 0x13d   :  { %623 = vmatmul.f32.gmra.mxu2 %v2621_v40  ;;  %950 = vmatpush.msrb.mxu0 %v2336_v28 }
 0x13e   :  { %1074 = vmatpush.msrb.mxu1 %v2287_v10  ;;  %1097 = vmatpush.msrb.mxu2 %v2282_v9  ;;  %v3382_v9 = vld [vmem:[#allocation15_spill] sm:$0xff]  ;;  %v3383_v10 = vld [vmem:[#allocation25_spill] sm:$0xff] }
 0x13f   :  { %951 = vmatpush.msrb.mxu0 %v2345_v32 }
 0x140   :  { %1075 = vmatpush.msrb.mxu1 %v2294_v12  ;;  %1098 = vmatpush.msrb.mxu2 %v2289_v11  ;;  %v3384_v11 = vld [vmem:[#allocation18_spill] sm:$0xff]  ;;  %v3385_v12 = vld [vmem:[#allocation17_spill] sm:$0xff] }
 0x141   :  { %952 = vmatpush.msrb.mxu0 %v2355_v35 }
 0x142   :  { %1076 = vmatpush.msrb.mxu1 %v2304_v15  ;;  %1099 = vmatpush.msrb.mxu2 %v2299_v14  ;;  %v3386_v14 = vld [vmem:[#allocation26_spill] sm:$0xff]  ;;  %v3387_v15 = vld [vmem:[#allocation20_spill] sm:$0xff] }
 0x143   :  { %953 = vmatpush.msrb.mxu0 %v2365_v38 }
 0x144   :  { %1077 = vmatpush.msrb.mxu1 %v2316_v20  ;;  %1100 = vmatpush.msrb.mxu2 %v2308_v18  ;;  %v3389_v18 = vld [vmem:[#allocation22_spill] sm:$0xff]  ;;  %v142_v20 = vpop.permute.xlu1 %141 }
 0x145   :  { %954 = vmatpush.msrb.mxu0 %v2459_v48 }
 0x146   :  { %1078 = vmatpush.msrb.mxu1 %v2325_v23  ;;  %1101 = vmatpush.msrb.mxu2 %v2320_v22  ;;  %v148_v22 = vmul.f32 %v142_v20, %v3391_v21  ;;  %v3392_v23 = vld [vmem:[#allocation28_spill] sm:$0xff] }
 0x147   :  { %955 = vmatpush.msrb.mxu0 %v2463_v49  ;;  %v149_v24 = vmul.f32 %v142_v20, %v3392_v23 }
 0x148   :  { %1079 = vmatpush.msrb.mxu1 %v2334_v27  ;;  %1102 = vmatpush.msrb.mxu2 %v2329_v26  ;;  %v3393_v27 = vld [vmem:[#allocation29_spill] sm:$0xff] }
 0x149   :  { %956 = vmatpush.msrb.mxu0 %v2465_v50  ;;  %v154_v28 = vadd.f32 %v148_v22, %v3393_v27 }
 0x14a   :  { %1080 = vmatpush.msrb.mxu1 %v2343_v31  ;;  %1103 = vmatpush.msrb.mxu2 %v2338_v30  ;;  %v3394_v30 = vld [vmem:[#allocation30_spill] sm:$0xff] }
 0x14b   :  { %957 = vmatpush.msrb.mxu0 %v2470_v51  ;;  %v155_v31 = vadd.f32 %v149_v24, %v3394_v30 }
 0x14c   :  { %1081 = vmatpush.msrb.mxu1 %v2353_v34  ;;  %1104 = vmatpush.msrb.mxu2 %v3376_v3  ;;  %v2672_v26 = vpop.permute.xlu1 %145 }
 0x14d   :  { %958 = vmatpush.msrb.mxu0 %v3377_v4  ;;  %v151_v56 = vmul.f32 %v2672_v26, %v3391_v21  ;;  %v152_v45 = vmul.f32 %v2672_v26, %v3392_v23 }
 0x14e   :  { %1082 = vmatpush.msrb.mxu1 %v3378_v5  ;;  %1105 = vmatpush.msrb.mxu2 %v3379_v6 }
 0x14f   :  { %959 = vmatpush.msrb.mxu0 %v3380_v7  ;;  %v157_v25 = vadd.f32 %v151_v56, %v3393_v27  ;;  %v158_v55 = vadd.f32 %v152_v45, %v3394_v30 }
 0x150   :  { %1083 = vmatpush.msrb.mxu1 %v3381_v8  ;;  %1106 = vmatpush.msrb.mxu2 %v3382_v9 }
 0x151   :  { %960 = vmatpush.msrb.mxu0 %v3383_v10 }
 0x152   :  { %1084 = vmatpush.msrb.mxu1 %v3384_v11  ;;  %1107 = vmatpush.msrb.mxu2 %v3385_v12  ;;  %v150_v11 = vmul.f32 %v142_v20, %v2585_v29 }
 0x153   :  { %961 = vmatpush.msrb.mxu0 %v3386_v14 }
 0x154   :  { %1085 = vmatpush.msrb.mxu1 %v3387_v15  ;;  %1108 = vmatpush.msrb.mxu2 %v3388_v16 }
 0x156   :  { %1086 = vmatpush.msrb.mxu1 %v3389_v18  ;;  %1109 = vmatpush.msrb.mxu2 %v3390_v19 }
 0x1b1   :  { %v575_v32 = vpop.f32.mrf.mxu0  ;;  %v598_v34 = vpop.f32.mrf.mxu1 }
 0x1b2   :  { %v627_v35 = vadd.f32 %v575_v32, %v154_v28  ;;  %v628_v38 = vadd.f32 %v598_v34, %v155_v31  ;;  %v156_v32 = vadd.f32 %v150_v11, %v2593_v57 }
 0x1b4   :  { %v1820_v36 = vmul.f32 -1.442695, %v627_v35  ;;  %v1821_v54 = vmul.f32 -1.442695, %v628_v38 }
 0x1b6   :  { %1916 = vpow2.f32 %v1820_v36 }
 0x1b7   :  { %1918 = vpow2.f32 %v1821_v54 }
 0x1b8   :  { %v621_v3 = vpop.f32.mrf.mxu2 }
 0x1b9   :  { %v578_v13 = vpop.f32.mrf.mxu0  ;;  %v601_v2 = vpop.f32.mrf.mxu1  ;;  %v707_v19 = vadd.f32 %v2590_v47, %v621_v3 }
 0x1ba   :  { %v629_v46 = vadd.f32 %v578_v13, %v157_v25  ;;  %v630_v52 = vadd.f32 %v601_v2, %v158_v55  ;;  %v153_v13 = vmul.f32 %v2672_v26, %v2585_v29  ;;  %v2765_v55 = vld [vmem:[#allocation3 + $0xf0] sm:$0xff] }
 0x1bc   :  { %v1917_v53 = vpop.eup %1916  ;;  %v1822_v0 = vmul.f32 -1.442695, %v629_v46  ;;  %v1823_v37 = vmul.f32 -1.442695, %v630_v52 }
 0x1bd   :  { %v1919_v43 = vpop.eup %1918  ;;  %v643_v33 = vadd.f32 1.0, %v1917_v53 }
 0x1be   :  { %v644_v41 = vadd.f32 1.0, %v1919_v43  ;;  %1920 = vpow2.f32 %v1822_v0 }
 0x1bf   :  { %1922 = vrcp.f32 %v643_v33  ;;  %v658_v5 = vand.u32 2147483648, %v643_v33  ;;  %v656_v8 = vand.u32 2147483647, %v643_v33  ;;  %vm652_vm2 = vweird.f32 %v643_v33 }
 0x1c0   :  { %1924 = vrcp.f32 %v644_v41  ;;  %v673_v38 = vand.u32 2147483648, %v644_v41  ;;  %vm667_vm6 = vweird.f32 %v644_v41  ;;  %v671_v45 = vand.u32 2147483647, %v644_v41  ;;  %v624_v46 = vpop.f32.mrf.mxu2 }
 0x1c1   :  { %1926 = vpow2.f32 %v1823_v37  ;;  %v659_v16 = vor.u32 1.1754944e-38, %v658_v5  ;;  %vm657_vm4 = vcmp.eq.f32.partialorder %v656_v8, 8.507059e+37 }
 0x1c2   :  { %v674_v0 = vor.u32 1.1754944e-38, %v673_v38  ;;  %vm672_vm11 = vcmp.eq.f32.partialorder %v671_v45, 8.507059e+37  ;;  %v2744_v38 = vld [vmem:[#allocation3 + $0x118] sm:$0xff]  ;;  %v2753_v45 = vld [vmem:[#allocation3 + $0x100] sm:$0xff] }
 0x1c4   :  { %v1921_v62 = vpop.eup %1920 }
 0x1c5   :  { %v1923_v17 = vpop.eup %1922  ;;  %v645_v58 = vadd.f32 1.0, %v1921_v62 }
 0x1c6   :  { %v1925_v42 = vpop.eup %1924  ;;  %v648_v44 = vmul.f32 %v1923_v17, %v643_v33  ;;  %vm653_vm1 = vweird.f32 %v1923_v17 }
 0x1c7   :  { %v1927_v61 = vpop.eup %1926  ;;  %v663_v60 = vmul.f32 %v1925_v42, %v644_v41  ;;  %1928 = vrcp.f32 %v645_v58  ;;  %vm654_vm3 = vmor %vm652_vm2, %vm653_vm1  ;;  %vm668_vm5 = vweird.f32 %v1925_v42  ;;  %v688_v56 = vand.u32 2147483648, %v645_v58 }
 0x1c8   :  { %v649_v39 = vsub.f32 1.0, %v648_v44  ;;  %v2682_v1 = vadd.f32 1.0, %v1927_v61  ;;  %v686_v25 = vand.u32 2147483647, %v645_v58  ;;  %vm2689_vm8 = vmor %vm667_vm6, %vm668_vm5  ;;  %vm682_vm9 = vweird.f32 %v645_v58 }
 0x1c9   :  { %v664_v63 = vsub.f32 1.0, %v663_v60  ;;  %v689_v33 = vor.u32 1.1754944e-38, %v688_v56  ;;  %v708_v41 = vadd.f32 %v2590_v47, %v624_v46  ;;  %v159_v44 = vadd.f32 %v153_v13, %v2593_v57  ;;  %v2750_v56 = vld [vmem:[#allocation3 + $0x128] sm:$0xff]  ;;  %v2768_v13 = vld [vmem:[#allocation3 + $0xf8] sm:$0xff] }
 0x1ca   :  { %v650_v6 = vmul.f32 %v1923_v17, %v649_v39  ;;  %1930 = vrcp.f32 %v2682_v1  ;;  %vm687_vm12 = vcmp.eq.f32.partialorder %v686_v25, 8.507059e+37  ;;  %vm697_vm14 = vweird.f32 %v2682_v1  ;;  %v2762_v25 = vld [vmem:[#allocation3 + $0xe8] sm:$0xff]  ;;  %v2774_v46 = vld [vmem:[#allocation3 + $0xd8] sm:$0xff] }
 0x1cb   :  { %v665_v9 = vmul.f32 %v1925_v42, %v664_v63  ;;  %v701_v60 = vand.u32 2147483647, %v2682_v1 }
 0x1cc   :  { %v651_v12 = vadd.f32 %v1923_v17, %v650_v6 }
 0x1cd   :  { %v1929_v15 = vpop.eup %1928  ;;  %v666_v28 = vadd.f32 %v1925_v42, %v665_v9  ;;  %vm702_vm0 = vcmp.eq.f32.partialorder %v701_v60, 8.507059e+37 }
 0x1ce   :  { %v655_v18 = vsel %vm654_vm3, %v1923_v17, %v651_v12  ;;  %v678_v22 = vmul.f32 %v1929_v15, %v645_v58  ;;  %vm683_vm7 = vweird.f32 %v1929_v15 }
 0x1cf   :  { %v660_v24 = vsel %vm657_vm4, %v659_v16, %v655_v18  ;;  %v670_v52 = vsel %vm2689_vm8, %v1925_v42, %v666_v28  ;;  %vm684_vm10 = vmor %vm682_vm9, %vm683_vm7  ;;  %v703_v42 = vand.u32 2147483648, %v2682_v1  ;;  %v2717_v18 = vld [vmem:[#allocation3 + $0x160] sm:$0xff]  ;;  %v2724_v28 = vld [vmem:[#allocation3 + $0x158] sm:$0xff] }
 0x1d0   :  { %v1931_v31 = vpop.eup %1930  ;;  %v709_v34 = vmul.f32 %v707_v19, %v660_v24  ;;  %v679_v35 = vsub.f32 1.0, %v678_v22  ;;  %v675_v62 = vsel %vm672_vm11, %v674_v0, %v670_v52  ;;  %v2721_v24 = vld [vmem:[#allocation3 + $0x150] sm:$0xff]  ;;  %v2777_v52 = vld [vmem:[#allocation3 + $0xe0] sm:$0xff]  ;;  %v2784_v0 = vld [vmem:[#allocation3 + $0xc8] sm:$0xff] }
 0x1d1   :  { %v693_v20 = vmul.f32 %v1931_v31, %v2682_v1  ;;  %vm698_vm13 = vweird.f32 %v1931_v31  ;;  %v715_v58 = vsub.f32 1.0, %v675_v62  ;;  %v719_v5 = vmul.f32 %v675_v62, %v2612_v59  ;;  %v2708_v1 = vld [vmem:[#allocation3 + $0x178] sm:$0xff]  ;;  %v2714_v59 = vld [vmem:[#allocation3 + $0x170] sm:$0xff]  ;;  %v2812_v62 = vld [vmem:[#allocation3 + $0x68] sm:$0xff] }
 0x1d2   :  { %v711_v36 = vadd.f32 %v709_v34, %v156_v32  ;;  %v680_v54 = vmul.f32 %v1929_v15, %v679_v35  ;;  %vm699_vm15 = vmor %vm697_vm14, %vm698_vm13  ;;  %v704_v8 = vor.u32 1.1754944e-38, %v703_v42  ;;  %v2732_v34 = vld [vmem:[#allocation3 + $0x138] sm:$0xff]  ;;  %v2735_v35 = vld [vmem:[#allocation3 + $0x140] sm:$0xff]  ;;  %3400 = vst [vmem:[#allocation13_spill] sm:$0xff] %v2812_v62  ;;  %v169_v42 = vpop.permute.xlu2 %168 }
 0x1d3   :  { %v694_v2 = vsub.f32 1.0, %v693_v20  ;;  %v2747_v20 = vld [vmem:[#allocation3 + $0x120] sm:$0xff] }
 0x1d4   :  { %1932 = vtanh.f32 %v711_v36  ;;  %v681_v53 = vadd.f32 %v1929_v15, %v680_v54  ;;  %v2756_v36 = vld [vmem:[#allocation3 + $0x108] sm:$0xff]  ;;  %v2759_v54 = vld [vmem:[#allocation3 + $0x110] sm:$0xff] }
 0x1d5   :  { %v695_v43 = vmul.f32 %v1931_v31, %v694_v2  ;;  %v2771_v2 = vld [vmem:[#allocation3 + $0xd0] sm:$0xff] }
 0x1d6   :  { %v685_v37 = vsel %vm684_vm10, %v1929_v15, %v681_v53  ;;  %v2711_v15 = vld [vmem:[#allocation3 + $0x168] sm:$0xff]  ;;  %v2781_v53 = vld [vmem:[#allocation3 + $0xc0] sm:$0xff] }
 0x1d7   :  { %v690_v17 = vsel %vm687_vm12, %v689_v33, %v685_v37  ;;  %v696_v26 = vadd.f32 %v1931_v31, %v695_v43  ;;  %v2788_v43 = vld [vmem:[#allocation3 + $0xa8] sm:$0xff]  ;;  %v2791_v33 = vld [vmem:[#allocation3 + $0xb0] sm:$0xff]  ;;  %v2798_v37 = vld [vmem:[#allocation3 + $0x98] sm:$0xff] }
 0x1d8   :  { %v710_v61 = vmul.f32 %v708_v41, %v690_v17  ;;  %v2805_v41 = vld [vmem:[#allocation3 + $0x80] sm:$0xff]  ;;  %v2819_v17 = vld [vmem:[#allocation3 + $0x50] sm:$0xff] }
 0x1d9   :  { %v700_v6 = vsel %vm699_vm15, %v1931_v31, %v696_v26  ;;  %v2727_v31 = vld [vmem:[#allocation3 + $0x148] sm:$0xff]  ;;  %3398 = vst [vmem:[#allocation23_spill] sm:$0xff] %v2805_v41  ;;  %v2826_v26 = vld [vmem:[#allocation3 + $0x38] sm:$0xff] }
 0x1da   :  { %v1933_v39 = vpop.eup %1932  ;;  %v712_v63 = vadd.f32 %v710_v61, %v159_v44  ;;  %v705_v11 = vsel %vm702_vm0, %v704_v8, %v700_v6  ;;  %3402 = vst [vmem:[#allocation16_spill] sm:$0xff] %v2819_v17  ;;  %v2833_v44 = vld [vmem:[#allocation3 + $0x20] sm:$0xff]  ;;  %v2844_v60 = vpop.permute.xlu2 %172 }
 0x1db   :  { %v717_v3 = vmul.f32 %v1933_v39, %v715_v58  ;;  %v716_v12 = vsub.f32 1.0, %v705_v11  ;;  %v720_v22 = vmul.f32 %v705_v11, %v2621_v40  ;;  %v2738_v40 = vld [vmem:[#allocation3 + $0x130] sm:$0xff]  ;;  %3404 = vst [vmem:[#allocation25_spill] sm:$0xff] %v2826_v26  ;;  %v2836_v61 = vld [vmem:[#allocation3] sm:$0xff]  ;;  %v176_v58 = vmul.f32 %v169_v42, %v3392_v23 }
 0x1dc   :  { %1934 = vtanh.f32 %v712_v63  ;;  %3406 = vst [vmem:[#allocation17_spill] sm:$0xff] %v2833_v44  ;;  %v175_v63 = vmul.f32 %v169_v42, %v3391_v21 }
 0x1dd   :  { %v2703_v9 = vadd.f32 %v719_v5, %v717_v3  ;;  %3407 = vst [vmem:[#allocation26_spill] sm:$0xff] %v2836_v61  ;;  %v179_v5 = vmul.f32 %v2844_v60, %v3392_v23 }
 0x1de   :  { %v181_v8 = vadd.f32 %v175_v63, %v3393_v27 }
 0x1df   :  { %745 = vmatmul.f32.vlgmr.msrb.gmra.mxu3 %v2703_v9  ;;  %768 = vmatmul.f32.vlgmr.msra.gmra.mxu0 %v2703_v9 }
 0x1e0   :  { %791 = vmatmul.f32.vlgmr.msra.gmra.mxu1 %v2703_v9  ;;  %1117 = vmatpush.msrb.mxu3 %v2708_v1 }
 0x1e1   :  { %1242 = vmatpush.msra.mxu0 %v2711_v15  ;;  %1265 = vmatpush.msra.mxu1 %v2714_v59 }
 0x1e2   :  { %v1935_v16 = vpop.eup %1934  ;;  %1118 = vmatpush.msrb.mxu3 %v2717_v18 }
 0x1e3   :  { %v718_v19 = vmul.f32 %v1935_v16, %v716_v12  ;;  %1243 = vmatpush.msra.mxu0 %v2721_v24  ;;  %1266 = vmatpush.msra.mxu1 %v2724_v28  ;;  %v185_v16 = vadd.f32 %v179_v5, %v3394_v30 }
 0x1e4   :  { %1119 = vmatpush.msrb.mxu3 %v2727_v31 }
 0x1e5   :  { %v2730_v32 = vadd.f32 %v720_v22, %v718_v19  ;;  %1244 = vmatpush.msra.mxu0 %v2732_v34  ;;  %1267 = vmatpush.msra.mxu1 %v2735_v35  ;;  %v178_v22 = vmul.f32 %v2844_v60, %v3391_v21  ;;  %v177_v21 = vmul.f32 %v169_v42, %v2585_v29 }
 0x1e6   :  { %1120 = vmatpush.msrb.mxu3 %v2738_v40 }
 0x1e7   :  { %748 = vmatmul.f32.gmra.mxu3 %v2730_v32  ;;  %771 = vmatmul.f32.gmra.mxu0 %v2730_v32 }
 0x1e8   :  { %794 = vmatmul.f32.gmra.mxu1 %v2730_v32  ;;  %1121 = vmatpush.msrb.mxu3 %v2744_v38 }
 0x1e9   :  { %1245 = vmatpush.msra.mxu0 %v2747_v20  ;;  %1268 = vmatpush.msra.mxu1 %v2750_v56 }
 0x1ea   :  { %1122 = vmatpush.msrb.mxu3 %v2753_v45 }
 0x1eb   :  { %1246 = vmatpush.msra.mxu0 %v2756_v36  ;;  %1269 = vmatpush.msra.mxu1 %v2759_v54 }
 0x1ec   :  { %1123 = vmatpush.msrb.mxu3 %v2762_v25 }
 0x1ed   :  { %1247 = vmatpush.msra.mxu0 %v2765_v55  ;;  %1270 = vmatpush.msra.mxu1 %v2768_v13 }
 0x1ee   :  { %1124 = vmatpush.msrb.mxu3 %v2771_v2 }
 0x1ef   :  { %1248 = vmatpush.msra.mxu0 %v2774_v46  ;;  %1271 = vmatpush.msra.mxu1 %v2777_v52 }
 0x1f0   :  { %1125 = vmatpush.msrb.mxu3 %v2459_v48  ;;  %v2795_v48 = vld [vmem:[#allocation3 + $0x90] sm:$0xff] }
 0x1f1   :  { %1249 = vmatpush.msra.mxu0 %v2781_v53  ;;  %1272 = vmatpush.msra.mxu1 %v2784_v0 }
 0x1f2   :  { %1126 = vmatpush.msrb.mxu3 %v2463_v49  ;;  %v2802_v49 = vld [vmem:[#allocation3 + $0x78] sm:$0xff] }
 0x1f3   :  { %1250 = vmatpush.msra.mxu0 %v2788_v43  ;;  %1273 = vmatpush.msra.mxu1 %v2791_v33  ;;  %3397 = vst [vmem:[#allocation12_spill] sm:$0xff] %v2802_v49 }
 0x1f4   :  { %1127 = vmatpush.msrb.mxu3 %v2465_v50  ;;  %v2809_v50 = vld [vmem:[#allocation3 + $0x60] sm:$0xff] }
 0x1f5   :  { %1251 = vmatpush.msra.mxu0 %v2795_v48  ;;  %1274 = vmatpush.msra.mxu1 %v2798_v37  ;;  %3399 = vst [vmem:[#allocation14_spill] sm:$0xff] %v2809_v50 }
 0x1f6   :  { %1128 = vmatpush.msrb.mxu3 %v2470_v51  ;;  %v2816_v51 = vld [vmem:[#allocation3 + $0x48] sm:$0xff] }
 0x1f7   :  { %1252 = vmatpush.msra.mxu0 %v2802_v49  ;;  %1275 = vmatpush.msra.mxu1 %v2805_v41  ;;  %3401 = vst [vmem:[#allocation24_spill] sm:$0xff] %v2816_v51 }
 0x1f8   :  { %1129 = vmatpush.msrb.mxu3 %v3377_v4  ;;  %v2823_v4 = vld [vmem:[#allocation3 + $0x30] sm:$0xff] }
 0x1f9   :  { %1253 = vmatpush.msra.mxu0 %v2809_v50  ;;  %1276 = vmatpush.msra.mxu1 %v2812_v62  ;;  %3403 = vst [vmem:[#allocation15_spill] sm:$0xff] %v2823_v4 }
 0x1fa   :  { %1130 = vmatpush.msrb.mxu3 %v3380_v7  ;;  %v2830_v7 = vld [vmem:[#allocation3 + $0x18] sm:$0xff] }
 0x1fb   :  { %1254 = vmatpush.msra.mxu0 %v2816_v51  ;;  %1277 = vmatpush.msra.mxu1 %v2819_v17  ;;  %3405 = vst [vmem:[#allocation18_spill] sm:$0xff] %v2830_v7 }
 0x1fc   :  { %1131 = vmatpush.msrb.mxu3 %v3383_v10  ;;  %v2839_v10 = vld [vmem:[#allocation3 + $0x8] sm:$0xff] }
 0x1fd   :  { %1255 = vmatpush.msra.mxu0 %v2823_v4  ;;  %1278 = vmatpush.msra.mxu1 %v2826_v26  ;;  %3408 = vst [vmem:[#allocation20_spill] sm:$0xff] %v2839_v10 }
 0x1fe   :  { %1132 = vmatpush.msrb.mxu3 %v3386_v14  ;;  %v182_v14 = vadd.f32 %v176_v58, %v3394_v30 }
 0x1ff   :  { %1256 = vmatpush.msra.mxu0 %v2830_v7  ;;  %1279 = vmatpush.msra.mxu1 %v2833_v44 }
 0x201   :  { %1257 = vmatpush.msra.mxu0 %v2836_v61  ;;  %1280 = vmatpush.msra.mxu1 %v2839_v10 }
 0x25c   :  { %v769_v39 = vpop.f32.mrf.mxu0 }
 0x25d   :  { %v799_v3 = vadd.f32 %v769_v39, %v182_v14 }
 0x25f   :  { %v1825_v6 = vmul.f32 -1.442695, %v799_v3  ;;  %v184_v3 = vadd.f32 %v178_v22, %v3393_v27 }
 0x261   :  { %1936 = vpow2.f32 %v1825_v6 }
 0x262   :  { %v746_v11 = vpop.f32.mrf.mxu3 }
 0x263   :  { %v798_v12 = vadd.f32 %v746_v11, %v181_v8 }
 0x264   :  { %v772_v19 = vpop.f32.mrf.mxu0 }
 0x265   :  { %v1824_v58 = vmul.f32 -1.442695, %v798_v12  ;;  %v801_v10 = vadd.f32 %v772_v19, %v185_v16 }
 0x267   :  { %v1937_v61 = vpop.eup %1936  ;;  %1938 = vpow2.f32 %v1824_v58  ;;  %v1827_v14 = vmul.f32 -1.442695, %v801_v10 }
 0x268   :  { %v2853_v39 = vadd.f32 1.0, %v1937_v61 }
 0x269   :  { %1940 = vpow2.f32 %v1827_v14 }
 0x26a   :  { %v749_v6 = vpop.f32.mrf.mxu3  ;;  %1942 = vrcp.f32 %v2853_v39  ;;  %v844_v62 = vand.u32 2147483648, %v2853_v39  ;;  %vm838_vm6 = vweird.f32 %v2853_v39 }
 0x26b   :  { %v800_v63 = vadd.f32 %v749_v6, %v184_v3 }
 0x26d   :  { %v1939_v8 = vpop.eup %1938  ;;  %v1826_v5 = vmul.f32 -1.442695, %v800_v63  ;;  %v792_v63 = vpop.f32.mrf.mxu1 }
 0x26e   :  { %v814_v11 = vadd.f32 1.0, %v1939_v8  ;;  %v878_v7 = vadd.f32 %v2590_v47, %v792_v63 }
 0x26f   :  { %v1941_v30 = vpop.eup %1940  ;;  %1944 = vpow2.f32 %v1826_v5 }
 0x270   :  { %1946 = vrcp.f32 %v814_v11  ;;  %v1943_v12 = vpop.eup %1942  ;;  %v2857_v16 = vadd.f32 1.0, %v1941_v30  ;;  %v829_v8 = vand.u32 2147483648, %v814_v11  ;;  %v827_v27 = vand.u32 2147483647, %v814_v11 }
 0x271   :  { %v834_v61 = vmul.f32 %v1943_v12, %v2853_v39  ;;  %vm823_vm2 = vweird.f32 %v814_v11  ;;  %vm839_vm5 = vweird.f32 %v1943_v12 }
 0x272   :  { %1948 = vrcp.f32 %v2857_v16  ;;  %vm828_vm4 = vcmp.eq.f32.partialorder %v827_v27, 8.507059e+37  ;;  %vm2871_vm8 = vmor %vm838_vm6, %vm839_vm5  ;;  %vm868_vm14 = vweird.f32 %v2857_v16 }
 0x273   :  { %v835_v14 = vsub.f32 1.0, %v834_v61  ;;  %v830_v61 = vor.u32 1.1754944e-38, %v829_v8  ;;  %v842_v8 = vand.u32 2147483647, %v2853_v39  ;;  %v845_v39 = vor.u32 1.1754944e-38, %v844_v62 }
 0x275   :  { %v1945_v10 = vpop.eup %1944  ;;  %v836_v30 = vmul.f32 %v1943_v12, %v835_v14  ;;  %v183_v14 = vadd.f32 %v177_v21, %v2593_v57  ;;  %v180_v21 = vmul.f32 %v2844_v60, %v2585_v29  ;;  %vm843_vm11 = vcmp.eq.f32.partialorder %v842_v8, 8.507059e+37 }
 0x276   :  { %v1947_v19 = vpop.eup %1946  ;;  %v816_v22 = vadd.f32 1.0, %v1945_v10 }
 0x277   :  { %v819_v58 = vmul.f32 %v1947_v19, %v814_v11  ;;  %vm824_vm1 = vweird.f32 %v1947_v19  ;;  %v837_v17 = vadd.f32 %v1943_v12, %v836_v30 }
 0x278   :  { %1950 = vrcp.f32 %v816_v22  ;;  %v2861_v3 = vpop.eup %1948  ;;  %vm825_vm3 = vmor %vm823_vm2, %vm824_vm1  ;;  %v859_v11 = vand.u32 2147483648, %v816_v22  ;;  %vm853_vm9 = vweird.f32 %v816_v22 }
 0x279   :  { %v820_v6 = vsub.f32 1.0, %v819_v58  ;;  %v864_v23 = vmul.f32 %v2861_v3, %v2857_v16  ;;  %vm869_vm13 = vweird.f32 %v2861_v3 }
 0x27a   :  { %vm870_vm15 = vmor %vm868_vm14, %vm869_vm13 }
 0x27b   :  { %v821_v5 = vmul.f32 %v1947_v19, %v820_v6  ;;  %v865_v6 = vsub.f32 1.0, %v864_v23 }
 0x27d   :  { %v822_v44 = vadd.f32 %v1947_v19, %v821_v5 }
 0x27e   :  { %v1951_v10 = vpop.eup %1950 }
 0x27f   :  { %v826_v26 = vsel %vm825_vm3, %v1947_v19, %v822_v44  ;;  %v849_v58 = vmul.f32 %v1951_v10, %v816_v22  ;;  %vm854_vm7 = vweird.f32 %v1951_v10  ;;  %v857_v44 = vand.u32 2147483647, %v816_v22  ;;  %v795_v19 = vpop.f32.mrf.mxu1 }
 0x280   :  { %v831_v4 = vsel %vm828_vm4, %v830_v61, %v826_v26  ;;  %v866_v26 = vmul.f32 %v2861_v3, %v865_v6  ;;  %vm855_vm10 = vmor %vm853_vm9, %vm854_vm7  ;;  %v879_v63 = vadd.f32 %v2590_v47, %v795_v19  ;;  %v186_v6 = vadd.f32 %v180_v21, %v2593_v57  ;;  %v2927_v21 = vld [vmem:[#allocation3 + $0xa0] sm:$0xff]  ;;  %v2937_v19 = vld [vmem:[#allocation3 + $0x70] sm:$0xff] }
 0x281   :  { %v850_v51 = vsub.f32 1.0, %v849_v58  ;;  %v880_v42 = vmul.f32 %v878_v7, %v831_v4  ;;  %v841_v4 = vsel %vm2871_vm8, %v1943_v12, %v837_v17  ;;  %vm858_vm12 = vcmp.eq.f32.partialorder %v857_v44, 8.507059e+37 }
 0x282   :  { %v846_v61 = vsel %vm843_vm11, %v845_v39, %v841_v4  ;;  %v867_v60 = vadd.f32 %v2861_v3, %v866_v26  ;;  %v874_v17 = vand.u32 2147483648, %v2857_v16  ;;  %v872_v22 = vand.u32 2147483647, %v2857_v16  ;;  %v2932_v26 = vld [vmem:[#allocation3 + $0x88] sm:$0xff]  ;;  %v2942_v4 = vld [vmem:[#allocation3 + $0x58] sm:$0xff]  ;;  %v2947_v39 = vld [vmem:[#allocation3 + $0x40] sm:$0xff] }
 0x283   :  { %v851_v5 = vmul.f32 %v1951_v10, %v850_v51  ;;  %v882_v23 = vadd.f32 %v880_v42, %v183_v14  ;;  %v860_v51 = vor.u32 1.1754944e-38, %v859_v11  ;;  %v886_v62 = vsub.f32 1.0, %v846_v61  ;;  %3411 = vst [vmem:[#allocation19_spill] sm:$0xff] %v2942_v4 }
 0x284   :  { %v890_v42 = vmul.f32 %v846_v61, %v2703_v9  ;;  %v871_v11 = vsel %vm870_vm15, %v2861_v3, %v867_v60  ;;  %v875_v8 = vor.u32 1.1754944e-38, %v874_v17  ;;  %vm873_vm0 = vcmp.eq.f32.partialorder %v872_v22, 8.507059e+37  ;;  %3413 = vst [vmem:[#allocation22_spill] sm:$0xff] %v2947_v39  ;;  %v3417_v61 = vld [vmem:[#allocation15_spill] sm:$0xff]  ;;  %v2957_v60 = vld [vmem:[#allocation3 + $0x10] sm:$0xff]  ;;  %v3421_v17 = vld [vmem:[#allocation17_spill] sm:$0xff]  ;;  %v196_v22 = vpop.permute.xlu0 %195 }
 0x285   :  { %v852_v7 = vadd.f32 %v1951_v10, %v851_v5  ;;  %1952 = vtanh.f32 %v882_v23  ;;  %3419 = vst [vmem:[#allocation31_spill] sm:$0xff] %v2957_v60 }
 0x286   :  { %v876_v44 = vsel %vm873_vm0, %v875_v8, %v871_v11  ;;  %v2966_v11 = vpop.permute.xlu1 %199  ;;  %v3426_v8 = vld [vmem:[#allocation29_spill] sm:$0xff] }
 0x287   :  { %v856_v30 = vsel %vm855_vm10, %v1951_v10, %v852_v7  ;;  %v887_v16 = vsub.f32 1.0, %v876_v44  ;;  %v891_v27 = vmul.f32 %v876_v44, %v2730_v32  ;;  %v2922_v32 = vld [vmem:[#allocation3 + $0xb8] sm:$0xff] }
 0x288   :  { %v861_v58 = vsel %vm858_vm12, %v860_v51, %v856_v30  ;;  %v3412_v7 = vld [vmem:[#allocation13_spill] sm:$0xff]  ;;  %v3414_v51 = vld [vmem:[#allocation24_spill] sm:$0xff]  ;;  %v2952_v30 = vld [vmem:[#allocation3 + $0x28] sm:$0xff] }
 0x289   :  { %v881_v12 = vmul.f32 %v879_v63, %v861_v58  ;;  %v3415_v63 = vld [vmem:[#allocation16_spill] sm:$0xff]  ;;  %3416 = vst [vmem:[#allocation21_spill] sm:$0xff] %v2952_v30  ;;  %v3418_v58 = vld [vmem:[#allocation25_spill] sm:$0xff] }
 0x28b   :  { %v1953_v14 = vpop.eup %1952  ;;  %v883_v47 = vadd.f32 %v881_v12, %v186_v6  ;;  %v3420_v6 = vld [vmem:[#allocation18_spill] sm:$0xff] }
 0x28c   :  { %v888_v10 = vmul.f32 %v1953_v14, %v886_v62  ;;  %v3422_v12 = vld [vmem:[#allocation26_spill] sm:$0xff]  ;;  %v3423_v62 = vld [vmem:[#allocation20_spill] sm:$0xff]  ;;  %v3424_v14 = vld [vmem:[#allocation27_spill] sm:$0xff] }
 0x28d   :  { %1954 = vtanh.f32 %v883_v47  ;;  %v202_v47 = vmul.f32 %v196_v22, %v3424_v14 }
 0x28e   :  { %v2889_v5 = vadd.f32 %v890_v42, %v888_v10  ;;  %v3425_v10 = vld [vmem:[#allocation28_spill] sm:$0xff] }
 0x28f   :  { %v203_v42 = vmul.f32 %v196_v22, %v3425_v10  ;;  %v208_v44 = vadd.f32 %v202_v47, %v3426_v8 }
 0x290   :  { %916 = vmatmul.f32.vlgmr.msra.gmra.mxu2 %v2889_v5  ;;  %939 = vmatmul.f32.vlgmr.msra.gmra.mxu3 %v2889_v5 }
 0x291   :  { %962 = vmatmul.f32.vlgmr.msrb.gmra.mxu0 %v2889_v5  ;;  %1288 = vmatpush.msra.mxu2 %v2708_v1 }
 0x292   :  { %1413 = vmatpush.msra.mxu3 %v2711_v15  ;;  %1436 = vmatpush.msrb.mxu0 %v2714_v59 }
 0x293   :  { %v1955_v9 = vpop.eup %1954  ;;  %1289 = vmatpush.msra.mxu2 %v2717_v18 }
 0x294   :  { %v889_v3 = vmul.f32 %v1955_v9, %v887_v16  ;;  %1414 = vmatpush.msra.mxu3 %v2721_v24  ;;  %1437 = vmatpush.msrb.mxu0 %v2724_v28  ;;  %v3427_v16 = vld [vmem:[#allocation30_spill] sm:$0xff] }
 0x295   :  { %1290 = vmatpush.msra.mxu2 %v2727_v31  ;;  %v209_v9 = vadd.f32 %v203_v42, %v3427_v16 }
 0x296   :  { %v2902_v23 = vadd.f32 %v891_v27, %v889_v3  ;;  %1415 = vmatpush.msra.mxu3 %v2732_v34  ;;  %1438 = vmatpush.msrb.mxu0 %v2735_v35 }
 0x297   :  { %1291 = vmatpush.msra.mxu2 %v2738_v40 }
 0x298   :  { %919 = vmatmul.f32.gmra.mxu2 %v2902_v23  ;;  %942 = vmatmul.f32.gmra.mxu3 %v2902_v23 }
 0x299   :  { %965 = vmatmul.f32.gmra.mxu0 %v2902_v23  ;;  %1292 = vmatpush.msra.mxu2 %v2744_v38 }
 0x29a   :  { %1416 = vmatpush.msra.mxu3 %v2747_v20  ;;  %1439 = vmatpush.msrb.mxu0 %v2750_v56 }
 0x29b   :  { %1293 = vmatpush.msra.mxu2 %v2753_v45 }
 0x29c   :  { %1417 = vmatpush.msra.mxu3 %v2756_v36  ;;  %1440 = vmatpush.msrb.mxu0 %v2759_v54 }
 0x29d   :  { %1294 = vmatpush.msra.mxu2 %v2762_v25 }
 0x29e   :  { %1418 = vmatpush.msra.mxu3 %v2765_v55  ;;  %1441 = vmatpush.msrb.mxu0 %v2768_v13 }
 0x29f   :  { %1295 = vmatpush.msra.mxu2 %v2771_v2 }
 0x2a0   :  { %1419 = vmatpush.msra.mxu3 %v2774_v46  ;;  %1442 = vmatpush.msrb.mxu0 %v2777_v52 }
 0x2a1   :  { %1296 = vmatpush.msra.mxu2 %v2922_v32 }
 0x2a2   :  { %1420 = vmatpush.msra.mxu3 %v2781_v53  ;;  %1443 = vmatpush.msrb.mxu0 %v2784_v0 }
 0x2a3   :  { %1297 = vmatpush.msra.mxu2 %v2927_v21 }
 0x2a4   :  { %1421 = vmatpush.msra.mxu3 %v2788_v43  ;;  %1444 = vmatpush.msrb.mxu0 %v2791_v33 }
 0x2a5   :  { %1298 = vmatpush.msra.mxu2 %v2932_v26 }
 0x2a6   :  { %1422 = vmatpush.msra.mxu3 %v2795_v48  ;;  %1445 = vmatpush.msrb.mxu0 %v2798_v37 }
 0x2a7   :  { %1299 = vmatpush.msra.mxu2 %v2937_v19 }
 0x2a8   :  { %1423 = vmatpush.msra.mxu3 %v2802_v49  ;;  %1446 = vmatpush.msrb.mxu0 %v2805_v41 }
 0x2a9   :  { %1300 = vmatpush.msra.mxu2 %v2942_v4 }
 0x2aa   :  { %1424 = vmatpush.msra.mxu3 %v2809_v50  ;;  %1447 = vmatpush.msrb.mxu0 %v3412_v7 }
 0x2ab   :  { %1301 = vmatpush.msra.mxu2 %v2947_v39 }
 0x2ac   :  { %1425 = vmatpush.msra.mxu3 %v3414_v51  ;;  %1448 = vmatpush.msrb.mxu0 %v3415_v63 }
 0x2ad   :  { %1302 = vmatpush.msra.mxu2 %v2952_v30 }
 0x2ae   :  { %1426 = vmatpush.msra.mxu3 %v3417_v61  ;;  %1449 = vmatpush.msrb.mxu0 %v3418_v58 }
 0x2af   :  { %1303 = vmatpush.msra.mxu2 %v2957_v60 }
 0x2b0   :  { %1427 = vmatpush.msra.mxu3 %v3420_v6  ;;  %1450 = vmatpush.msrb.mxu0 %v3421_v17 }
 0x2b2   :  { %1428 = vmatpush.msra.mxu3 %v3422_v12  ;;  %1451 = vmatpush.msrb.mxu0 %v3423_v62  ;;  %v205_v12 = vmul.f32 %v2966_v11, %v3424_v14  ;;  %v206_v62 = vmul.f32 %v2966_v11, %v3425_v10 }
 0x2b4   :  { %v211_v61 = vadd.f32 %v205_v12, %v3426_v8  ;;  %v212_v47 = vadd.f32 %v206_v62, %v3427_v16 }
 0x313   :  { %v917_v3 = vpop.f32.mrf.mxu2  ;;  %v940_v27 = vpop.f32.mrf.mxu3 }
 0x314   :  { %v969_v6 = vadd.f32 %v917_v3, %v208_v44  ;;  %v970_v60 = vadd.f32 %v940_v27, %v209_v9 }
 0x316   :  { %v1828_v17 = vmul.f32 -1.442695, %v969_v6  ;;  %v1829_v58 = vmul.f32 -1.442695, %v970_v60 }
 0x318   :  { %1956 = vpow2.f32 %v1828_v17 }
 0x319   :  { %1958 = vpow2.f32 %v1829_v58 }
 0x31b   :  { %v920_v30 = vpop.f32.mrf.mxu2  ;;  %v943_v42 = vpop.f32.mrf.mxu3 }
 0x31c   :  { %v971_v63 = vadd.f32 %v920_v30, %v211_v61  ;;  %v972_v51 = vadd.f32 %v943_v42, %v212_v47 }
 0x31e   :  { %v1957_v44 = vpop.eup %1956  ;;  %v1830_v9 = vmul.f32 -1.442695, %v971_v63  ;;  %v1831_v14 = vmul.f32 -1.442695, %v972_v51  ;;  %v963_v63 = vpop.f32.mrf.mxu0 }
 0x31f   :  { %v1959_v3 = vpop.eup %1958  ;;  %v985_v27 = vadd.f32 1.0, %v1957_v44 }
 0x320   :  { %v986_v39 = vadd.f32 1.0, %v1959_v3  ;;  %1960 = vpow2.f32 %v1830_v9  ;;  %v204_v9 = vmul.f32 %v196_v22, %v2585_v29 }
 0x321   :  { %1962 = vrcp.f32 %v985_v27  ;;  %v1000_v47 = vand.u32 2147483648, %v985_v27  ;;  %v998_v44 = vand.u32 2147483647, %v985_v27  ;;  %vm994_vm2 = vweird.f32 %v985_v27 }
 0x322   :  { %1964 = vrcp.f32 %v986_v39  ;;  %v210_v22 = vadd.f32 %v204_v9, %v2593_v57  ;;  %vm1009_vm6 = vweird.f32 %v986_v39  ;;  %v1013_v41 = vand.u32 2147483647, %v986_v39 }
 0x323   :  { %1966 = vpow2.f32 %v1831_v14  ;;  %v1001_v10 = vor.u32 1.1754944e-38, %v1000_v47  ;;  %vm999_vm4 = vcmp.eq.f32.partialorder %v998_v44, 8.507059e+37  ;;  %v207_v44 = vmul.f32 %v2966_v11, %v2585_v29 }
 0x324   :  { %vm1014_vm11 = vcmp.eq.f32.partialorder %v1013_v41, 8.507059e+37 }
 0x326   :  { %v1961_v60 = vpop.eup %1960 }
 0x327   :  { %v1963_v58 = vpop.eup %1962  ;;  %v987_v6 = vadd.f32 1.0, %v1961_v60 }
 0x328   :  { %v1965_v17 = vpop.eup %1964  ;;  %v990_v12 = vmul.f32 %v1963_v58, %v985_v27  ;;  %vm995_vm1 = vweird.f32 %v1963_v58 }
 0x329   :  { %v1967_v62 = vpop.eup %1966  ;;  %v1005_v16 = vmul.f32 %v1965_v17, %v986_v39  ;;  %1968 = vrcp.f32 %v987_v6  ;;  %vm996_vm3 = vmor %vm994_vm2, %vm995_vm1  ;;  %vm1010_vm5 = vweird.f32 %v1965_v17  ;;  %v1030_v47 = vand.u32 2147483648, %v987_v6 }
 0x32a   :  { %v991_v30 = vsub.f32 1.0, %v990_v12  ;;  %v2976_v61 = vadd.f32 1.0, %v1967_v62  ;;  %v2983_v12 = vld [vmem:[%s3289_s5] ss:$0 sm:$0xff]  ;;  %vm2988_vm8 = vmor %vm1009_vm6, %vm1010_vm5  ;;  %vm1024_vm9 = vweird.f32 %v987_v6 }
 0x32b   :  { %v1006_v42 = vsub.f32 1.0, %v1005_v16  ;;  %v1049_v16 = vadd.f32 %v2983_v12, %v963_v63  ;;  %v1028_v63 = vand.u32 2147483647, %v987_v6 }
 0x32c   :  { %v992_v51 = vmul.f32 %v1963_v58, %v991_v30  ;;  %1970 = vrcp.f32 %v2976_v61  ;;  %vm1039_vm14 = vweird.f32 %v2976_v61 }
 0x32d   :  { %v1007_v14 = vmul.f32 %v1965_v17, %v1006_v42  ;;  %vm1029_vm12 = vcmp.eq.f32.partialorder %v1028_v63, 8.507059e+37 }
 0x32e   :  { %v993_v3 = vadd.f32 %v1963_v58, %v992_v51  ;;  %v1015_v51 = vand.u32 2147483648, %v986_v39  ;;  %v1031_v39 = vor.u32 1.1754944e-38, %v1030_v47 }
 0x32f   :  { %v1969_v60 = vpop.eup %1968  ;;  %v1008_v7 = vadd.f32 %v1965_v17, %v1007_v14  ;;  %v966_v14 = vpop.f32.mrf.mxu0 }
 0x330   :  { %v997_v62 = vsel %vm996_vm3, %v1963_v58, %v993_v3  ;;  %v1020_v30 = vmul.f32 %v1969_v60, %v987_v6  ;;  %vm1025_vm7 = vweird.f32 %v1969_v60 }
 0x331   :  { %v1002_v8 = vsel %vm999_vm4, %v1001_v10, %v997_v62  ;;  %vm1026_vm10 = vmor %vm1024_vm9, %vm1025_vm7 }
 0x332   :  { %v1971_v42 = vpop.eup %1970  ;;  %v1021_v27 = vsub.f32 1.0, %v1020_v30  ;;  %v1051_v50 = vmul.f32 %v1049_v16, %v1002_v8  ;;  %v1012_v8 = vsel %vm2988_vm8, %v1965_v17, %v1008_v7  ;;  %v1016_v16 = vor.u32 1.1754944e-38, %v1015_v51 }
 0x333   :  { %v1035_v4 = vmul.f32 %v1971_v42, %v2976_v61  ;;  %v1050_v30 = vadd.f32 %v2983_v12, %v966_v14  ;;  %vm1040_vm13 = vweird.f32 %v1971_v42  ;;  %v1045_v7 = vand.u32 2147483648, %v2976_v61 }
 0x334   :  { %v1022_v49 = vmul.f32 %v1969_v60, %v1021_v27  ;;  %v1053_v10 = vadd.f32 %v1051_v50, %v210_v22  ;;  %v1017_v50 = vsel %vm1014_vm11, %v1016_v16, %v1012_v8  ;;  %v1043_v17 = vand.u32 2147483647, %v2976_v61  ;;  %vm1041_vm15 = vmor %vm1039_vm14, %vm1040_vm13 }
 0x335   :  { %v1036_v9 = vsub.f32 1.0, %v1035_v4  ;;  %v213_v4 = vadd.f32 %v207_v44, %v2593_v57  ;;  %v1057_v6 = vsub.f32 1.0, %v1017_v50  ;;  %v1046_v58 = vor.u32 1.1754944e-38, %v1045_v7 }
 0x336   :  { %v1023_v3 = vadd.f32 %v1969_v60, %v1022_v49  ;;  %1972 = vtanh.f32 %v1053_v10  ;;  %vm1044_vm0 = vcmp.eq.f32.partialorder %v1043_v17, 8.507059e+37 }
 0x337   :  { %v1037_v62 = vmul.f32 %v1971_v42, %v1036_v9 }
 0x338   :  { %v1027_v27 = vsel %vm1026_vm10, %v1969_v60, %v1023_v3  ;;  %v1061_v60 = vmul.f32 %v1017_v50, %v2889_v5 }
 0x339   :  { %v1032_v22 = vsel %vm1029_vm12, %v1031_v39, %v1027_v27  ;;  %v1038_v11 = vadd.f32 %v1971_v42, %v1037_v62  ;;  %v3449_v62 = vld [vmem:[#allocation30_spill] sm:$0xff] }
 0x33a   :  { %v1052_v49 = vmul.f32 %v1050_v30, %v1032_v22 }
 0x33b   :  { %v1042_v63 = vsel %vm1041_vm15, %v1971_v42, %v1038_v11 }
 0x33c   :  { %v1973_v51 = vpop.eup %1972  ;;  %v1054_v41 = vadd.f32 %v1052_v49, %v213_v4  ;;  %v1047_v44 = vsel %vm1044_vm0, %v1046_v58, %v1042_v63 }
 0x33d   :  { %v1059_v47 = vmul.f32 %v1973_v51, %v1057_v6  ;;  %v1058_v61 = vsub.f32 1.0, %v1047_v44  ;;  %v1062_v14 = vmul.f32 %v1047_v44, %v2902_v23  ;;  %v3448_v23 = vld [vmem:[#allocation28_spill] sm:$0xff] }
 0x33e   :  { %1974 = vtanh.f32 %v1054_v41 }
 0x33f   :  { %v3002_v10 = vadd.f32 %v1061_v60, %v1059_v47 }
 0x341   :  { %1087 = vmatmul.f32.vlgmr.msrb.gmra.mxu1 %v3002_v10  ;;  %1110 = vmatmul.f32.vlgmr.msrb.gmra.mxu2 %v3002_v10 }
 0x342   :  { %1133 = vmatmul.f32.vlgmr.msrb.gmra.mxu3 %v3002_v10  ;;  %1459 = vmatpush.msrb.mxu1 %v2708_v1  ;;  %v3430_v1 = vld [vmem:[#allocation12_spill] sm:$0xff] }
 0x343   :  { %1584 = vmatpush.msrb.mxu2 %v2711_v15  ;;  %1607 = vmatpush.msrb.mxu3 %v2714_v59  ;;  %v3431_v15 = vld [vmem:[#allocation23_spill] sm:$0xff] }
 0x344   :  { %v1975_v5 = vpop.eup %1974  ;;  %1460 = vmatpush.msrb.mxu1 %v2717_v18  ;;  %v3432_v59 = vld [vmem:[#allocation19_spill] sm:$0xff]  ;;  %v3433_v18 = vld [vmem:[#allocation14_spill] sm:$0xff] }
 0x345   :  { %v1060_v42 = vmul.f32 %v1975_v5, %v1058_v61  ;;  %1585 = vmatpush.msrb.mxu2 %v2721_v24  ;;  %1608 = vmatpush.msrb.mxu3 %v2724_v28  ;;  %v3434_v24 = vld [vmem:[#allocation13_spill] sm:$0xff]  ;;  %v3435_v28 = vld [vmem:[#allocation22_spill] sm:$0xff] }
 0x346   :  { %1461 = vmatpush.msrb.mxu1 %v2727_v31  ;;  %v3436_v31 = vld [vmem:[#allocation24_spill] sm:$0xff] }
 0x347   :  { %v3015_v9 = vadd.f32 %v1062_v14, %v1060_v42  ;;  %1586 = vmatpush.msrb.mxu2 %v2732_v34  ;;  %1609 = vmatpush.msrb.mxu3 %v2735_v35  ;;  %v3437_v34 = vld [vmem:[#allocation16_spill] sm:$0xff]  ;;  %v3438_v35 = vld [vmem:[#allocation21_spill] sm:$0xff] }
 0x348   :  { %1462 = vmatpush.msrb.mxu1 %v2738_v40 }
 0x349   :  { %1090 = vmatmul.f32.gmra.mxu1 %v3015_v9  ;;  %1113 = vmatmul.f32.gmra.mxu2 %v3015_v9 }
 0x34a   :  { %1136 = vmatmul.f32.gmra.mxu3 %v3015_v9  ;;  %1463 = vmatpush.msrb.mxu1 %v2744_v38 }
 0x34b   :  { %1587 = vmatpush.msrb.mxu2 %v2747_v20  ;;  %1610 = vmatpush.msrb.mxu3 %v2750_v56  ;;  %v3439_v20 = vld [vmem:[#allocation15_spill] sm:$0xff]  ;;  %v3440_v56 = vld [vmem:[#allocation25_spill] sm:$0xff] }
 0x34c   :  { %1464 = vmatpush.msrb.mxu1 %v2753_v45 }
 0x34d   :  { %1588 = vmatpush.msrb.mxu2 %v2756_v36  ;;  %1611 = vmatpush.msrb.mxu3 %v2759_v54  ;;  %v3441_v36 = vld [vmem:[#allocation31_spill] sm:$0xff]  ;;  %v3442_v54 = vld [vmem:[#allocation18_spill] sm:$0xff] }
 0x34e   :  { %1465 = vmatpush.msrb.mxu1 %v2762_v25 }
 0x34f   :  { %1589 = vmatpush.msrb.mxu2 %v2765_v55  ;;  %1612 = vmatpush.msrb.mxu3 %v2768_v13  ;;  %v3443_v55 = vld [vmem:[#allocation17_spill] sm:$0xff]  ;;  %v3444_v13 = vld [vmem:[#allocation26_spill] sm:$0xff] }
 0x350   :  { %1466 = vmatpush.msrb.mxu1 %v2771_v2 }
 0x351   :  { %1590 = vmatpush.msrb.mxu2 %v2774_v46  ;;  %1613 = vmatpush.msrb.mxu3 %v2777_v52  ;;  %v3445_v46 = vld [vmem:[#allocation20_spill] sm:$0xff]  ;;  %v223_v52 = vpop.permute.xlu2 %222 }
 0x352   :  { %1467 = vmatpush.msrb.mxu1 %v2922_v32  ;;  %v230_v8 = vmul.f32 %v223_v52, %v3448_v23 }
 0x353   :  { %1591 = vmatpush.msrb.mxu2 %v2781_v53  ;;  %1614 = vmatpush.msrb.mxu3 %v2784_v0  ;;  %v3446_v53 = vld [vmem:[#allocation27_spill] sm:$0xff] }
 0x354   :  { %1468 = vmatpush.msrb.mxu1 %v2927_v21  ;;  %v229_v0 = vmul.f32 %v223_v52, %v3446_v53  ;;  %v236_v30 = vadd.f32 %v230_v8, %v3449_v62 }
 0x355   :  { %1592 = vmatpush.msrb.mxu2 %v2788_v43  ;;  %1615 = vmatpush.msrb.mxu3 %v2791_v33  ;;  %v3447_v43 = vld [vmem:[#allocation29_spill] sm:$0xff] }
 0x356   :  { %1469 = vmatpush.msrb.mxu1 %v2932_v26  ;;  %v235_v33 = vadd.f32 %v229_v0, %v3447_v43 }
 0x357   :  { %1593 = vmatpush.msrb.mxu2 %v2795_v48  ;;  %1616 = vmatpush.msrb.mxu3 %v2798_v37  ;;  %v3063_v48 = vpop.permute.xlu1 %226 }
 0x358   :  { %1470 = vmatpush.msrb.mxu1 %v2937_v19  ;;  %v232_v16 = vmul.f32 %v3063_v48, %v3446_v53  ;;  %v233_v4 = vmul.f32 %v3063_v48, %v3448_v23 }
 0x359   :  { %1594 = vmatpush.msrb.mxu2 %v3430_v1  ;;  %1617 = vmatpush.msrb.mxu3 %v3431_v15 }
 0x35a   :  { %1471 = vmatpush.msrb.mxu1 %v3432_v59  ;;  %v238_v22 = vadd.f32 %v232_v16, %v3447_v43  ;;  %v239_v41 = vadd.f32 %v233_v4, %v3449_v62 }
 0x35b   :  { %1595 = vmatpush.msrb.mxu2 %v3433_v18  ;;  %1618 = vmatpush.msrb.mxu3 %v3434_v24 }
 0x35c   :  { %1472 = vmatpush.msrb.mxu1 %v3435_v28 }
 0x35d   :  { %1596 = vmatpush.msrb.mxu2 %v3436_v31  ;;  %1619 = vmatpush.msrb.mxu3 %v3437_v34 }
 0x35e   :  { %1473 = vmatpush.msrb.mxu1 %v3438_v35 }
 0x35f   :  { %1597 = vmatpush.msrb.mxu2 %v3439_v20  ;;  %1620 = vmatpush.msrb.mxu3 %v3440_v56  ;;  %v231_v56 = vmul.f32 %v223_v52, %v2585_v29 }
 0x360   :  { %1474 = vmatpush.msrb.mxu1 %v3441_v36 }
 0x361   :  { %1598 = vmatpush.msrb.mxu2 %v3442_v54  ;;  %1621 = vmatpush.msrb.mxu3 %v3443_v55  ;;  %v237_v16 = vadd.f32 %v231_v56, %v2593_v57 }
 0x363   :  { %1599 = vmatpush.msrb.mxu2 %v3444_v13  ;;  %1622 = vmatpush.msrb.mxu3 %v3445_v46 }
 0x3be   :  { %v1088_v37 = vpop.f32.mrf.mxu1 }
 0x3bf   :  { %v1140_v3 = vadd.f32 %v1088_v37, %v235_v33 }
 0x3c1   :  { %v1832_v39 = vmul.f32 -1.442695, %v1140_v3 }
 0x3c3   :  { %1976 = vpow2.f32 %v1832_v39 }
 0x3c4   :  { %v1111_v27 = vpop.f32.mrf.mxu2 }
 0x3c5   :  { %v1141_v50 = vadd.f32 %v1111_v27, %v236_v30  ;;  %v1134_v1 = vpop.f32.mrf.mxu3 }
 0x3c6   :  { %v1091_v11 = vpop.f32.mrf.mxu1  ;;  %v1220_v33 = vadd.f32 %v2983_v12, %v1134_v1 }
 0x3c7   :  { %v1833_v7 = vmul.f32 -1.442695, %v1141_v50  ;;  %v1142_v49 = vadd.f32 %v1091_v11, %v238_v22 }
 0x3c9   :  { %v1977_v6 = vpop.eup %1976  ;;  %1978 = vpow2.f32 %v1833_v7  ;;  %v1834_v17 = vmul.f32 -1.442695, %v1142_v49 }
 0x3ca   :  { %v1156_v51 = vadd.f32 1.0, %v1977_v6 }
 0x3cb   :  { %1980 = vpow2.f32 %v1834_v17 }
 0x3cc   :  { %1982 = vrcp.f32 %v1156_v51  ;;  %v1114_v47 = vpop.f32.mrf.mxu2  ;;  %v1171_v18 = vand.u32 2147483648, %v1156_v51  ;;  %v1169_v34 = vand.u32 2147483647, %v1156_v51  ;;  %vm1165_vm2 = vweird.f32 %v1156_v51 }
 0x3cd   :  { %v1143_v60 = vadd.f32 %v1114_v47, %v239_v41  ;;  %v1137_v49 = vpop.f32.mrf.mxu3  ;;  %v234_v41 = vmul.f32 %v3063_v48, %v2585_v29 }
 0x3ce   :  { %v1172_v0 = vor.u32 1.1754944e-38, %v1171_v18  ;;  %vm1170_vm4 = vcmp.eq.f32.partialorder %v1169_v34, 8.507059e+37 }
 0x3cf   :  { %v1979_v63 = vpop.eup %1978  ;;  %v1835_v58 = vmul.f32 -1.442695, %v1143_v60 }
 0x3d0   :  { %v1157_v44 = vadd.f32 1.0, %v1979_v63 }
 0x3d1   :  { %v1981_v61 = vpop.eup %1980  ;;  %1984 = vpow2.f32 %v1835_v58 }
 0x3d2   :  { %v1983_v5 = vpop.eup %1982  ;;  %1986 = vrcp.f32 %v1157_v44  ;;  %v1158_v42 = vadd.f32 1.0, %v1981_v61  ;;  %v1186_v52 = vand.u32 2147483648, %v1157_v44  ;;  %vm1180_vm6 = vweird.f32 %v1157_v44 }
 0x3d3   :  { %v1161_v14 = vmul.f32 %v1983_v5, %v1156_v51  ;;  %vm1166_vm1 = vweird.f32 %v1983_v5  ;;  %v1184_v4 = vand.u32 2147483647, %v1157_v44 }
 0x3d4   :  { %1988 = vrcp.f32 %v1158_v42  ;;  %vm1167_vm3 = vmor %vm1165_vm2, %vm1166_vm1  ;;  %v1199_v22 = vand.u32 2147483647, %v1158_v42  ;;  %v1201_v11 = vand.u32 2147483648, %v1158_v42  ;;  %vm1195_vm8 = vweird.f32 %v1158_v42 }
 0x3d5   :  { %v1162_v15 = vsub.f32 1.0, %v1161_v14  ;;  %v1187_v47 = vor.u32 1.1754944e-38, %v1186_v52  ;;  %vm1185_vm11 = vcmp.eq.f32.partialorder %v1184_v4, 8.507059e+37 }
 0x3d6   :  { %v1202_v61 = vor.u32 1.1754944e-38, %v1201_v11  ;;  %vm1200_vm12 = vcmp.eq.f32.partialorder %v1199_v22, 8.507059e+37 }
 0x3d7   :  { %v1985_v24 = vpop.eup %1984  ;;  %v1163_v31 = vmul.f32 %v1983_v5, %v1162_v15  ;;  %v240_v15 = vadd.f32 %v234_v41, %v2593_v57 }
 0x3d8   :  { %v1987_v20 = vpop.eup %1986  ;;  %v3074_v54 = vadd.f32 1.0, %v1985_v24 }
 0x3d9   :  { %v1176_v55 = vmul.f32 %v1987_v20, %v1157_v44  ;;  %v1164_v13 = vadd.f32 %v1983_v5, %v1163_v31  ;;  %vm1181_vm5 = vweird.f32 %v1987_v20  ;;  %v1221_v44 = vadd.f32 %v2983_v12, %v1137_v49 }
 0x3da   :  { %v1989_v46 = vpop.eup %1988  ;;  %1990 = vrcp.f32 %v3074_v54  ;;  %vm1182_vm9 = vmor %vm1180_vm6, %vm1181_vm5  ;;  %v1216_v24 = vand.u32 2147483648, %v3074_v54  ;;  %v1214_v34 = vand.u32 2147483647, %v3074_v54  ;;  %vm1210_vm14 = vweird.f32 %v3074_v54 }
 0x3db   :  { %v1177_v37 = vsub.f32 1.0, %v1176_v55  ;;  %v1168_v8 = vsel %vm1167_vm3, %v1983_v5, %v1164_v13  ;;  %v1191_v3 = vmul.f32 %v1989_v46, %v1158_v42  ;;  %vm1196_vm7 = vweird.f32 %v1989_v46 }
 0x3dc   :  { %v1173_v39 = vsel %vm1170_vm4, %v1172_v0, %v1168_v8  ;;  %vm1197_vm10 = vmor %vm1195_vm8, %vm1196_vm7  ;;  %vm1215_vm0 = vcmp.eq.f32.partialorder %v1214_v34, 8.507059e+37 }
 0x3dd   :  { %v1178_v30 = vmul.f32 %v1987_v20, %v1177_v37  ;;  %v1222_v27 = vmul.f32 %v1220_v33, %v1173_v39  ;;  %v1192_v50 = vsub.f32 1.0, %v1191_v3  ;;  %v1217_v33 = vor.u32 1.1754944e-38, %v1216_v24  ;;  %v2106_v39 = vld [vmem:[#allocation3 + $0x160] sm:$0xff] }
 0x3df   :  { %v1224_v7 = vadd.f32 %v1222_v27, %v237_v16  ;;  %v1193_v6 = vmul.f32 %v1989_v46, %v1192_v50  ;;  %v1179_v17 = vadd.f32 %v1987_v20, %v1178_v30  ;;  %v2107_v30 = vld [vmem:[#allocation3 + $0x148] sm:$0xff] }
 0x3e0   :  { %v1991_v51 = vpop.eup %1990 }
 0x3e1   :  { %1992 = vtanh.f32 %v1224_v7  ;;  %v1206_v60 = vmul.f32 %v1991_v51, %v3074_v54  ;;  %v1194_v63 = vadd.f32 %v1989_v46, %v1193_v6  ;;  %v1183_v58 = vsel %vm1182_vm9, %v1987_v20, %v1179_v17  ;;  %v2105_v54 = vld [vmem:[#allocation3 + $0x178] sm:$0xff] }
 0x3e2   :  { %v1188_v1 = vsel %vm1185_vm11, %v1187_v47, %v1183_v58  ;;  %vm1211_vm13 = vweird.f32 %v1991_v51 }
 0x3e3   :  { %v1207_v5 = vsub.f32 1.0, %v1206_v60  ;;  %v1198_v14 = vsel %vm1197_vm10, %v1989_v46, %v1194_v63  ;;  %v1228_v31 = vsub.f32 1.0, %v1188_v1  ;;  %v1232_v46 = vmul.f32 %v1188_v1, %v3002_v10  ;;  %vm1212_vm15 = vmor %vm1210_vm14, %vm1211_vm13 }
 0x3e4   :  { %v1203_v48 = vsel %vm1200_vm12, %v1202_v61, %v1198_v14 }
 0x3e5   :  { %v1208_v42 = vmul.f32 %v1991_v51, %v1207_v5  ;;  %v1223_v18 = vmul.f32 %v1221_v44, %v1203_v48 }
 0x3e7   :  { %v1993_v20 = vpop.eup %1992  ;;  %v1225_v56 = vadd.f32 %v1223_v18, %v240_v15  ;;  %v1209_v55 = vadd.f32 %v1991_v51, %v1208_v42 }
 0x3e8   :  { %v1230_v13 = vmul.f32 %v1993_v20, %v1228_v31 }
 0x3e9   :  { %1994 = vtanh.f32 %v1225_v56  ;;  %v1213_v0 = vsel %vm1212_vm15, %v1991_v51, %v1209_v55 }
 0x3ea   :  { %v3088_v37 = vadd.f32 %v1232_v46, %v1230_v13  ;;  %v1218_v8 = vsel %vm1215_vm0, %v1217_v33, %v1213_v0 }
 0x3eb   :  { %v1229_v3 = vsub.f32 1.0, %v1218_v8  ;;  %v1233_v52 = vmul.f32 %v1218_v8, %v3015_v9 }
 0x3ec   :  { %1258 = vmatmul.f32.vlgmr.msra.gmra.mxu0 %v3088_v37  ;;  %1281 = vmatmul.f32.vlgmr.msra.gmra.mxu1 %v3088_v37 }
 0x3ed   :  { %1304 = vmatmul.f32.vlgmr.msra.gmra.mxu2 %v3088_v37  ;;  %1630 = vmatpush.msra.mxu0 %v2105_v54 }
 0x3ef   :  { %v1995_v16 = vpop.eup %1994  ;;  %1631 = vmatpush.msra.mxu0 %v2106_v39 }
 0x3f0   :  { %v1231_v10 = vmul.f32 %v1995_v16, %v1229_v3 }
 0x3f1   :  { %1632 = vmatpush.msra.mxu0 %v2107_v30 }
 0x3f2   :  { %v3094_v27 = vadd.f32 %v1233_v52, %v1231_v10 }
 0x3f3   :  { %1633 = vmatpush.msra.mxu0 %v2738_v40  ;;  %v250_v40 = vpop.permute.xlu2 %249 }
 0x3f4   :  { %1261 = vmatmul.f32.gmra.mxu0 %v3094_v27  ;;  %1284 = vmatmul.f32.gmra.mxu1 %v3094_v27  ;;  %v258_v56 = vmul.f32 %v250_v40, %v2585_v29 }
 0x3f5   :  { %1307 = vmatmul.f32.gmra.mxu2 %v3094_v27  ;;  %1634 = vmatpush.msra.mxu0 %v2744_v38  ;;  %v256_v38 = vmul.f32 %v250_v40, %v3446_v53 }
 0x3f6   :  { %v264_v39 = vadd.f32 %v258_v56, %v2593_v57 }
 0x3f7   :  { %1635 = vmatpush.msra.mxu0 %v2753_v45  ;;  %v257_v45 = vmul.f32 %v250_v40, %v3448_v23 }
 0x3f9   :  { %1636 = vmatpush.msra.mxu0 %v2762_v25  ;;  %v3114_v25 = vpop.permute.xlu0 %253 }
 0x3fb   :  { %1637 = vmatpush.msra.mxu0 %v2771_v2  ;;  %v262_v2 = vadd.f32 %v256_v38, %v3447_v43 }
 0x3fd   :  { %1638 = vmatpush.msra.mxu0 %v2922_v32  ;;  %v263_v32 = vadd.f32 %v257_v45, %v3449_v62 }
 0x3ff   :  { %1639 = vmatpush.msra.mxu0 %v2927_v21 }
 0x401   :  { %1640 = vmatpush.msra.mxu0 %v2932_v26 }
 0x403   :  { %1641 = vmatpush.msra.mxu0 %v2937_v19 }
 0x405   :  { %1642 = vmatpush.msra.mxu0 %v3432_v59  ;;  %v259_v59 = vmul.f32 %v3114_v25, %v3446_v53 }
 0x407   :  { %1643 = vmatpush.msra.mxu0 %v3435_v28  ;;  %v260_v28 = vmul.f32 %v3114_v25, %v3448_v23  ;;  %v265_v50 = vadd.f32 %v259_v59, %v3447_v43 }
 0x409   :  { %1644 = vmatpush.msra.mxu0 %v3438_v35  ;;  %v266_v22 = vadd.f32 %v260_v28, %v3449_v62 }
 0x40b   :  { %1645 = vmatpush.msra.mxu0 %v3441_v36 }
 0x469   :  { %v1259_v21 = vpop.f32.mrf.mxu0  ;;  %v1282_v26 = vpop.f32.mrf.mxu1 }
 0x46a   :  { %v1311_v19 = vadd.f32 %v1259_v21, %v262_v2  ;;  %v1312_v9 = vadd.f32 %v1282_v26, %v263_v32 }
 0x46c   :  { %v1836_v35 = vmul.f32 -1.442695, %v1311_v19  ;;  %v1837_v36 = vmul.f32 -1.442695, %v1312_v9  ;;  %v261_v19 = vmul.f32 %v3114_v25, %v2585_v29 }
 0x46e   :  { %1996 = vpow2.f32 %v1836_v35 }
 0x46f   :  { %1998 = vpow2.f32 %v1837_v36 }
 0x470   :  { %v1305_v18 = vpop.f32.mrf.mxu2 }
 0x471   :  { %v1262_v11 = vpop.f32.mrf.mxu0  ;;  %v1285_v4 = vpop.f32.mrf.mxu1  ;;  %v1391_v33 = vadd.f32 %v2983_v12, %v1305_v18 }
 0x472   :  { %v1313_v7 = vadd.f32 %v1262_v11, %v265_v50  ;;  %v1314_v49 = vadd.f32 %v1285_v4, %v266_v22 }
 0x474   :  { %v1997_v6 = vpop.eup %1996  ;;  %v1838_v17 = vmul.f32 -1.442695, %v1313_v7  ;;  %v1839_v47 = vmul.f32 -1.442695, %v1314_v49 }
 0x475   :  { %v1999_v51 = vpop.eup %1998  ;;  %v1327_v41 = vadd.f32 1.0, %v1997_v6  ;;  %v267_v6 = vadd.f32 %v261_v19, %v2593_v57 }
 0x476   :  { %v1328_v60 = vadd.f32 1.0, %v1999_v51  ;;  %2000 = vpow2.f32 %v1838_v17 }
 0x477   :  { %2002 = vrcp.f32 %v1327_v41  ;;  %v1342_v24 = vand.u32 2147483648, %v1327_v41  ;;  %v1340_v34 = vand.u32 2147483647, %v1327_v41  ;;  %vm1336_vm2 = vweird.f32 %v1327_v41 }
 0x478   :  { %2004 = vrcp.f32 %v1328_v60  ;;  %v1357_v30 = vand.u32 2147483648, %v1328_v60  ;;  %vm1351_vm6 = vweird.f32 %v1328_v60  ;;  %v1355_v45 = vand.u32 2147483647, %v1328_v60  ;;  %v1308_v59 = vpop.f32.mrf.mxu2 }
 0x479   :  { %2006 = vpow2.f32 %v1839_v47  ;;  %v1343_v46 = vor.u32 1.1754944e-38, %v1342_v24  ;;  %vm1341_vm4 = vcmp.eq.f32.partialorder %v1340_v34, 8.507059e+37  ;;  %v1392_v4 = vadd.f32 %v2983_v12, %v1308_v59 }
 0x47a   :  { %v1358_v36 = vor.u32 1.1754944e-38, %v1357_v30  ;;  %vm1356_vm11 = vcmp.eq.f32.partialorder %v1355_v45, 8.507059e+37 }
 0x47c   :  { %v2001_v63 = vpop.eup %2000 }
 0x47d   :  { %v2003_v58 = vpop.eup %2002  ;;  %v1329_v61 = vadd.f32 1.0, %v2001_v63 }
 0x47e   :  { %v2005_v44 = vpop.eup %2004  ;;  %v1332_v5 = vmul.f32 %v2003_v58, %v1327_v41  ;;  %vm1337_vm1 = vweird.f32 %v2003_v58 }
 0x47f   :  { %v2007_v14 = vpop.eup %2006  ;;  %v1347_v1 = vmul.f32 %v2005_v44, %v1328_v60  ;;  %2008 = vrcp.f32 %v1329_v61  ;;  %vm1338_vm3 = vmor %vm1336_vm2, %vm1337_vm1  ;;  %vm1352_vm5 = vweird.f32 %v2005_v44  ;;  %v1372_v38 = vand.u32 2147483648, %v1329_v61 }
 0x480   :  { %v1333_v15 = vsub.f32 1.0, %v1332_v5  ;;  %v3124_v48 = vadd.f32 1.0, %v2007_v14  ;;  %v1370_v21 = vand.u32 2147483647, %v1329_v61  ;;  %vm3131_vm8 = vmor %vm1351_vm6, %vm1352_vm5  ;;  %vm1366_vm9 = vweird.f32 %v1329_v61 }
 0x481   :  { %v1348_v42 = vsub.f32 1.0, %v1347_v1  ;;  %v1373_v22 = vor.u32 1.1754944e-38, %v1372_v38 }
 0x482   :  { %v1334_v31 = vmul.f32 %v2003_v58, %v1333_v15  ;;  %2010 = vrcp.f32 %v3124_v48  ;;  %vm1371_vm12 = vcmp.eq.f32.partialorder %v1370_v21, 8.507059e+37  ;;  %v1387_v51 = vand.u32 2147483648, %v3124_v48 }
 0x483   :  { %v1349_v20 = vmul.f32 %v2005_v44, %v1348_v42  ;;  %vm1381_vm14 = vweird.f32 %v3124_v48  ;;  %v1385_v47 = vand.u32 2147483647, %v3124_v48 }
 0x484   :  { %v1335_v55 = vadd.f32 %v2003_v58, %v1334_v31  ;;  %v1388_v5 = vor.u32 1.1754944e-38, %v1387_v51 }
 0x485   :  { %v2009_v13 = vpop.eup %2008  ;;  %v1350_v3 = vadd.f32 %v2005_v44, %v1349_v20  ;;  %vm1386_vm0 = vcmp.eq.f32.partialorder %v1385_v47, 8.507059e+37  ;;  %v3158_v20 = vpop.permute.xlu2 %280 }
 0x486   :  { %v1339_v0 = vsel %vm1338_vm3, %v2003_v58, %v1335_v55  ;;  %v1362_v8 = vmul.f32 %v2009_v13, %v1329_v61  ;;  %vm1367_vm7 = vweird.f32 %v2009_v13 }
 0x487   :  { %v1344_v54 = vsel %vm1341_vm4, %v1343_v46, %v1339_v0  ;;  %v1354_v28 = vsel %vm3131_vm8, %v2005_v44, %v1350_v3  ;;  %vm1368_vm10 = vmor %vm1366_vm9, %vm1367_vm7 }
 0x488   :  { %v2011_v16 = vpop.eup %2010  ;;  %v1393_v10 = vmul.f32 %v1391_v33, %v1344_v54  ;;  %v1363_v52 = vsub.f32 1.0, %v1362_v8  ;;  %v1359_v7 = vsel %vm1356_vm11, %v1358_v36, %v1354_v28 }
 0x489   :  { %v1377_v40 = vmul.f32 %v2011_v16, %v3124_v48  ;;  %vm1382_vm13 = vweird.f32 %v2011_v16  ;;  %v1399_v41 = vsub.f32 1.0, %v1359_v7  ;;  %v1403_v61 = vmul.f32 %v1359_v7, %v3088_v37  ;;  %v277_v37 = vpop.permute.xlu1 %276 }
 0x48a   :  { %v1395_v2 = vadd.f32 %v1393_v10, %v264_v39  ;;  %v1364_v32 = vmul.f32 %v2009_v13, %v1363_v52  ;;  %vm1383_vm15 = vmor %vm1381_vm14, %vm1382_vm13  ;;  %v284_v31 = vmul.f32 %v277_v37, %v3448_v23  ;;  %v283_v55 = vmul.f32 %v277_v37, %v3446_v53 }
 0x48b   :  { %v1378_v9 = vsub.f32 1.0, %v1377_v40  ;;  %v285_v47 = vmul.f32 %v277_v37, %v2585_v29 }
 0x48c   :  { %2012 = vtanh.f32 %v1395_v2  ;;  %v1365_v35 = vadd.f32 %v2009_v13, %v1364_v32  ;;  %v290_v34 = vadd.f32 %v284_v31, %v3449_v62  ;;  %v289_v0 = vadd.f32 %v283_v55, %v3447_v43 }
 0x48d   :  { %v1379_v50 = vmul.f32 %v2011_v16, %v1378_v9 }
 0x48e   :  { %v1369_v11 = vsel %vm1368_vm10, %v2009_v13, %v1365_v35 }
 0x48f   :  { %v1374_v49 = vsel %vm1371_vm12, %v1373_v22, %v1369_v11  ;;  %v1380_v25 = vadd.f32 %v2011_v16, %v1379_v50 }
 0x490   :  { %v1394_v17 = vmul.f32 %v1392_v4, %v1374_v49 }
 0x491   :  { %v1384_v44 = vsel %vm1383_vm15, %v2011_v16, %v1380_v25  ;;  %v286_v16 = vmul.f32 %v3158_v20, %v3446_v53 }
 0x492   :  { %v2013_v60 = vpop.eup %2012  ;;  %v1396_v63 = vadd.f32 %v1394_v17, %v267_v6  ;;  %v1389_v1 = vsel %vm1386_vm0, %v1388_v5, %v1384_v44 }
 0x493   :  { %v1401_v58 = vmul.f32 %v2013_v60, %v1399_v41  ;;  %v1400_v15 = vsub.f32 1.0, %v1389_v1  ;;  %v1404_v18 = vmul.f32 %v1389_v1, %v3094_v27  ;;  %v287_v27 = vmul.f32 %v3158_v20, %v3448_v23 }
 0x494   :  { %2014 = vtanh.f32 %v1396_v63  ;;  %v292_v38 = vadd.f32 %v286_v16, %v3447_v43 }
 0x495   :  { %v3145_v14 = vadd.f32 %v1403_v61, %v1401_v58  ;;  %v293_v54 = vadd.f32 %v287_v27, %v3449_v62 }
 0x497   :  { %1429 = vmatmul.f32.vlgmr.msra.gmra.mxu3 %v3145_v14  ;;  %1452 = vmatmul.f32.vlgmr.msrb.gmra.mxu0 %v3145_v14 }
 0x498   :  { %1475 = vmatmul.f32.vlgmr.msrb.gmra.mxu1 %v3145_v14 }
 0x49a   :  { %v2015_v48 = vpop.eup %2014 }
 0x49b   :  { %v1402_v42 = vmul.f32 %v2015_v48, %v1400_v15 }
 0x49d   :  { %v3151_v24 = vadd.f32 %v1404_v18, %v1402_v42  ;;  %v291_v42 = vadd.f32 %v285_v47, %v2593_v57 }
 0x49f   :  { %1432 = vmatmul.f32.gmra.mxu3 %v3151_v24  ;;  %1455 = vmatmul.f32.gmra.mxu0 %v3151_v24 }
 0x4a0   :  { %1478 = vmatmul.f32.gmra.mxu1 %v3151_v24 }
 0x514   :  { %v1453_v56 = vpop.f32.mrf.mxu0 }
 0x515   :  { %v1483_v13 = vadd.f32 %v1453_v56, %v290_v34  ;;  %v1476_v49 = vpop.f32.mrf.mxu1 }
 0x516   :  { %v1562_v61 = vadd.f32 %v2983_v12, %v1476_v49 }
 0x517   :  { %v1841_v46 = vmul.f32 -1.442695, %v1483_v13 }
 0x519   :  { %2016 = vpow2.f32 %v1841_v46 }
 0x51a   :  { %v1430_v33 = vpop.f32.mrf.mxu3 }
 0x51b   :  { %v1482_v8 = vadd.f32 %v1430_v33, %v289_v0  ;;  %v288_v0 = vmul.f32 %v3158_v20, %v2585_v29 }
 0x51c   :  { %v1456_v3 = vpop.f32.mrf.mxu0 }
 0x51d   :  { %v1840_v39 = vmul.f32 -1.442695, %v1482_v8  ;;  %v1485_v10 = vadd.f32 %v1456_v3, %v293_v54  ;;  %v1479_v8 = vpop.f32.mrf.mxu1 }
 0x51f   :  { %v2017_v52 = vpop.eup %2016  ;;  %2018 = vpow2.f32 %v1840_v39  ;;  %v1843_v30 = vmul.f32 -1.442695, %v1485_v10  ;;  %v1563_v10 = vadd.f32 %v2983_v12, %v1479_v8 }
 0x520   :  { %v3167_v40 = vadd.f32 1.0, %v2017_v52 }
 0x521   :  { %2020 = vpow2.f32 %v1843_v30 }
 0x522   :  { %v1433_v45 = vpop.f32.mrf.mxu3  ;;  %2022 = vrcp.f32 %v3167_v40  ;;  %v1528_v31 = vand.u32 2147483648, %v3167_v40  ;;  %vm1522_vm6 = vweird.f32 %v3167_v40  ;;  %v1526_v56 = vand.u32 2147483647, %v3167_v40 }
 0x523   :  { %v1484_v2 = vadd.f32 %v1433_v45, %v292_v38  ;;  %v294_v38 = vadd.f32 %v288_v0, %v2593_v57  ;;  %v1756_v0 = vld [vmem:[#allocation6 + $0x38] sm:$0xff] }
 0x524   :  { %v1529_v16 = vor.u32 1.1754944e-38, %v1528_v31  ;;  %vm1527_vm11 = vcmp.eq.f32.partialorder %v1526_v56, 8.507059e+37 }
 0x525   :  { %v2019_v32 = vpop.eup %2018  ;;  %v1842_v21 = vmul.f32 -1.442695, %v1484_v2 }
 0x526   :  { %v1498_v26 = vadd.f32 1.0, %v2019_v32 }
 0x527   :  { %v2021_v19 = vpop.eup %2020  ;;  %2024 = vpow2.f32 %v1842_v21 }
 0x528   :  { %2026 = vrcp.f32 %v1498_v26  ;;  %v2023_v9 = vpop.eup %2022  ;;  %v3171_v59 = vadd.f32 1.0, %v2021_v19  ;;  %v1513_v25 = vand.u32 2147483648, %v1498_v26  ;;  %v1511_v17 = vand.u32 2147483647, %v1498_v26 }
 0x529   :  { %v1518_v28 = vmul.f32 %v2023_v9, %v3167_v40  ;;  %vm1507_vm2 = vweird.f32 %v1498_v26  ;;  %vm1523_vm5 = vweird.f32 %v2023_v9 }
 0x52a   :  { %2028 = vrcp.f32 %v3171_v59  ;;  %v1514_v58 = vor.u32 1.1754944e-38, %v1513_v25  ;;  %vm1512_vm4 = vcmp.eq.f32.partialorder %v1511_v17, 8.507059e+37  ;;  %vm3185_vm8 = vmor %vm1522_vm6, %vm1523_vm5  ;;  %v1558_v45 = vand.u32 2147483648, %v3171_v59 }
 0x52b   :  { %v1519_v11 = vsub.f32 1.0, %v1518_v28  ;;  %vm1552_vm14 = vweird.f32 %v3171_v59  ;;  %v1556_v21 = vand.u32 2147483647, %v3171_v59 }
 0x52d   :  { %v2025_v35 = vpop.eup %2024  ;;  %v1520_v51 = vmul.f32 %v2023_v9, %v1519_v11  ;;  %vm1557_vm0 = vcmp.eq.f32.partialorder %v1556_v21, 8.507059e+37 }
 0x52e   :  { %v2027_v36 = vpop.eup %2026  ;;  %v1500_v50 = vadd.f32 1.0, %v2025_v35  ;;  %v1559_v35 = vor.u32 1.1754944e-38, %v1558_v45 }
 0x52f   :  { %v1503_v22 = vmul.f32 %v2027_v36, %v1498_v26  ;;  %vm1508_vm1 = vweird.f32 %v2027_v36  ;;  %v1521_v48 = vadd.f32 %v2023_v9, %v1520_v51 }
 0x530   :  { %2030 = vrcp.f32 %v1500_v50  ;;  %v3175_v4 = vpop.eup %2028  ;;  %vm1509_vm3 = vmor %vm1507_vm2, %vm1508_vm1  ;;  %v1543_v34 = vand.u32 2147483648, %v1500_v50  ;;  %v1541_v13 = vand.u32 2147483647, %v1500_v50  ;;  %vm1537_vm9 = vweird.f32 %v1500_v50 }
 0x531   :  { %v1504_v7 = vsub.f32 1.0, %v1503_v22  ;;  %v1548_v41 = vmul.f32 %v3175_v4, %v3171_v59  ;;  %v1525_v54 = vsel %vm3185_vm8, %v2023_v9, %v1521_v48  ;;  %vm1553_vm13 = vweird.f32 %v3175_v4  ;;  %v1761_v48 = vld [vmem:[#allocation6 + $0x60] sm:$0xff] }
 0x532   :  { %v1544_v39 = vor.u32 1.1754944e-38, %v1543_v34  ;;  %vm1542_vm12 = vcmp.eq.f32.partialorder %v1541_v13, 8.507059e+37  ;;  %v1530_v30 = vsel %vm1527_vm11, %v1529_v16, %v1525_v54  ;;  %vm1554_vm15 = vmor %vm1552_vm14, %vm1553_vm13  ;;  %v1758_v34 = vld [vmem:[#allocation6 + $0x48] sm:$0xff]  ;;  %v1757_v13 = vld [vmem:[#allocation6 + $0x40] sm:$0xff] }
 0x533   :  { %v1505_v6 = vmul.f32 %v2027_v36, %v1504_v7  ;;  %v1549_v15 = vsub.f32 1.0, %v1548_v41  ;;  %v1570_v32 = vsub.f32 1.0, %v1530_v30  ;;  %v1574_v9 = vmul.f32 %v1530_v30, %v3145_v14  ;;  %v1763_v41 = vld [vmem:[#allocation6 + $0x70] sm:$0xff]  ;;  %v1753_v16 = vld [vmem:[#allocation6 + $0x20] sm:$0xff] }
 0x535   :  { %v1506_v60 = vadd.f32 %v2027_v36, %v1505_v6  ;;  %v1550_v33 = vmul.f32 %v3175_v4, %v1549_v15  ;;  %v1764_v6 = vld [vmem:[#allocation6 + $0x78] sm:$0xff] }
 0x536   :  { %v2031_v63 = vpop.eup %2030  ;;  %1769 = vmatpush.msra.mxu1 %v1764_v6  ;;  %1848 = vmatpush.msra.mxu2 %v1764_v6 }
 0x537   :  { %v1510_v44 = vsel %vm1509_vm3, %v2027_v36, %v1506_v60  ;;  %v1533_v5 = vmul.f32 %v2031_v63, %v1500_v50  ;;  %vm1538_vm7 = vweird.f32 %v2031_v63  ;;  %v1551_v20 = vadd.f32 %v3175_v4, %v1550_v33 }
 0x538   :  { %v1515_v1 = vsel %vm1512_vm4, %v1514_v58, %v1510_v44  ;;  %vm1539_vm10 = vmor %vm1537_vm9, %vm1538_vm7  ;;  %1770 = vmatpush.msra.mxu1 %v1763_v41  ;;  %1849 = vmatpush.msra.mxu2 %v1763_v41 }
 0x539   :  { %v1534_v18 = vsub.f32 1.0, %v1533_v5  ;;  %v1564_v37 = vmul.f32 %v1562_v61, %v1515_v1  ;;  %v1555_v28 = vsel %vm1554_vm15, %v3175_v4, %v1551_v20  ;;  %v3214_v4 = vpop.permute.xlu2 %303  ;;  %v1762_v61 = vld [vmem:[#allocation6 + $0x68] sm:$0xff] }
 0x53a   :  { %v1560_v50 = vsel %vm1557_vm0, %v1559_v35, %v1555_v28  ;;  %v310_v49 = vmul.f32 %v3214_v4, %v3446_v53  ;;  %v311_v25 = vmul.f32 %v3214_v4, %v3448_v23  ;;  %1771 = vmatpush.msra.mxu1 %v1762_v61  ;;  %1850 = vmatpush.msra.mxu2 %v1762_v61 }
 0x53b   :  { %v1535_v55 = vmul.f32 %v2031_v63, %v1534_v18  ;;  %v1566_v46 = vadd.f32 %v1564_v37, %v291_v42  ;;  %v1571_v59 = vsub.f32 1.0, %v1560_v50  ;;  %v1575_v7 = vmul.f32 %v1560_v50, %v3151_v24  ;;  %v3220_v24 = vpop.permute.xlu1 %307  ;;  %v1760_v42 = vld [vmem:[#allocation6 + $0x58] sm:$0xff]  ;;  %v1759_v18 = vld [vmem:[#allocation6 + $0x50] sm:$0xff]  ;;  %v1749_v50 = vld [vmem:[#allocation6] sm:$0xff] }
 0x53c   :  { %v316_v17 = vadd.f32 %v310_v49, %v3447_v43  ;;  %v317_v51 = vadd.f32 %v311_v25, %v3449_v62  ;;  %v313_v44 = vmul.f32 %v3220_v24, %v3446_v53  ;;  %v314_v5 = vmul.f32 %v3220_v24, %v3448_v23  ;;  %1772 = vmatpush.msra.mxu1 %v1761_v48  ;;  %v2108_v25 = vld [vmem:[%s3289_s5] ss:$0 sm:$0xff] }
 0x53d   :  { %v1536_v3 = vadd.f32 %v2031_v63, %v1535_v55  ;;  %2032 = vtanh.f32 %v1566_v46  ;;  %1851 = vmatpush.msra.mxu2 %v1761_v48 }
 0x53e   :  { %1773 = vmatpush.msra.mxu1 %v1760_v42  ;;  %v319_v31 = vadd.f32 %v313_v44, %v3447_v43  ;;  %v320_v37 = vadd.f32 %v314_v5, %v3449_v62  ;;  %v1755_v62 = vld [vmem:[#allocation6 + $0x30] sm:$0xff] }
 0x53f   :  { %v1540_v52 = vsel %vm1539_vm10, %v2031_v63, %v1536_v3  ;;  %1852 = vmatpush.msra.mxu2 %v1760_v42  ;;  %v1754_v3 = vld [vmem:[#allocation6 + $0x28] sm:$0xff] }
 0x540   :  { %v1545_v40 = vsel %vm1542_vm12, %v1544_v39, %v1540_v52  ;;  %1774 = vmatpush.msra.mxu1 %v1759_v18 }
 0x541   :  { %v1565_v2 = vmul.f32 %v1563_v10, %v1545_v40  ;;  %1853 = vmatpush.msra.mxu2 %v1759_v18  ;;  %v1752_v10 = vld [vmem:[#allocation6 + $0x18] sm:$0xff] }
 0x542   :  { %1775 = vmatpush.msra.mxu1 %v1758_v34 }
 0x543   :  { %v2033_v26 = vpop.eup %2032  ;;  %v1567_v12 = vadd.f32 %v1565_v2, %v294_v38  ;;  %1854 = vmatpush.msra.mxu2 %v1758_v34  ;;  %v1751_v38 = vld [vmem:[#allocation6 + $0x10] sm:$0xff] }
 0x544   :  { %v1572_v19 = vmul.f32 %v2033_v26, %v1570_v32  ;;  %1776 = vmatpush.msra.mxu1 %v1757_v13  ;;  %v1750_v26 = vld [vmem:[#allocation6 + $0x8] sm:$0xff] }
 0x545   :  { %2034 = vtanh.f32 %v1567_v12  ;;  %1855 = vmatpush.msra.mxu2 %v1757_v13 }
 0x546   :  { %v3203_v36 = vadd.f32 %v1574_v9, %v1572_v19  ;;  %1777 = vmatpush.msra.mxu1 %v1756_v0 }
 0x547   :  { %1856 = vmatpush.msra.mxu2 %v1756_v0 }
 0x548   :  { %1600 = vmatmul.f32.vlgmr.msrb.gmra.mxu2 %v3203_v36  ;;  %1623 = vmatmul.f32.vlgmr.msrb.gmra.mxu3 %v3203_v36 }
 0x549   :  { %1646 = vmatmul.f32.vlgmr.msra.gmra.mxu0 %v3203_v36  ;;  %1778 = vmatpush.msra.mxu1 %v1755_v62 }
 0x54a   :  { %1857 = vmatpush.msra.mxu2 %v1755_v62 }
 0x54b   :  { %v2035_v22 = vpop.eup %2034  ;;  %1779 = vmatpush.msra.mxu1 %v1754_v3 }
 0x54c   :  { %v1573_v11 = vmul.f32 %v2035_v22, %v1571_v59  ;;  %1858 = vmatpush.msra.mxu2 %v1754_v3  ;;  %v312_v22 = vmul.f32 %v3214_v4, %v2585_v29 }
 0x54d   :  { %1780 = vmatpush.msra.mxu1 %v1753_v16 }
 0x54e   :  { %v3209_v14 = vadd.f32 %v1575_v7, %v1573_v11  ;;  %1859 = vmatpush.msra.mxu2 %v1753_v16 }
 0x54f   :  { %1781 = vmatpush.msra.mxu1 %v1752_v10 }
 0x550   :  { %1603 = vmatmul.f32.gmra.mxu2 %v3209_v14  ;;  %1626 = vmatmul.f32.gmra.mxu3 %v3209_v14 }
 0x551   :  { %1649 = vmatmul.f32.gmra.mxu0 %v3209_v14  ;;  %1860 = vmatpush.msra.mxu2 %v1752_v10 }
 0x552   :  { %1782 = vmatpush.msra.mxu1 %v1751_v38 }
 0x553   :  { %1861 = vmatpush.msra.mxu2 %v1751_v38 }
 0x554   :  { %1783 = vmatpush.msra.mxu1 %v1750_v26 }
 0x555   :  { %1862 = vmatpush.msra.mxu2 %v1750_v26 }
 0x556   :  { %1784 = vmatpush.msra.mxu1 %v1749_v50 }
 0x557   :  { %1863 = vmatpush.msra.mxu2 %v1749_v50 }
 0x5c6   :  { %v1647_v12 = vpop.f32.mrf.mxu0 }
 0x5c7   :  { %v1733_v6 = vadd.f32 %v2108_v25, %v1647_v12 }
 0x5cb   :  { %v1601_v47 = vpop.f32.mrf.mxu2  ;;  %v1624_v60 = vpop.f32.mrf.mxu3 }
 0x5cc   :  { %v1653_v63 = vadd.f32 %v1601_v47, %v316_v17  ;;  %v1654_v58 = vadd.f32 %v1624_v60, %v317_v51  ;;  %v318_v60 = vadd.f32 %v312_v22, %v2593_v57 }
 0x5ce   :  { %v1844_v1 = vmul.f32 -1.442695, %v1653_v63  ;;  %v1845_v15 = vmul.f32 -1.442695, %v1654_v58 }
 0x5d0   :  { %2036 = vpow2.f32 %v1844_v1 }
 0x5d1   :  { %2038 = vpow2.f32 %v1845_v15 }
 0x5d3   :  { %v1604_v53 = vpop.f32.mrf.mxu2  ;;  %v1627_v56 = vpop.f32.mrf.mxu3 }
 0x5d4   :  { %v1655_v23 = vadd.f32 %v1604_v53, %v319_v31  ;;  %v1656_v55 = vadd.f32 %v1627_v56, %v320_v37  ;;  %v315_v31 = vmul.f32 %v3220_v24, %v2585_v29  ;;  %v1650_v37 = vpop.f32.mrf.mxu0 }
 0x5d6   :  { %v2037_v27 = vpop.eup %2036  ;;  %v1846_v46 = vmul.f32 -1.442695, %v1655_v23  ;;  %v1847_v54 = vmul.f32 -1.442695, %v1656_v55 }
 0x5d7   :  { %v2039_v33 = vpop.eup %2038  ;;  %v1669_v8 = vadd.f32 1.0, %v2037_v27  ;;  %v1734_v27 = vadd.f32 %v2108_v25, %v1650_v37 }
 0x5d8   :  { %v3230_v43 = vadd.f32 1.0, %v2039_v33  ;;  %2040 = vpow2.f32 %v1846_v46  ;;  %v321_v33 = vadd.f32 %v315_v31, %v2593_v57 }
 0x5d9   :  { %2042 = vrcp.f32 %v1669_v8  ;;  %v1684_v19 = vand.u32 2147483648, %v1669_v8  ;;  %v1682_v35 = vand.u32 2147483647, %v1669_v8  ;;  %vm1678_vm2 = vweird.f32 %v1669_v8 }
 0x5da   :  { %2044 = vrcp.f32 %v3230_v43  ;;  %v1699_v58 = vand.u32 2147483648, %v3230_v43  ;;  %vm1693_vm6 = vweird.f32 %v3230_v43  ;;  %v1697_v1 = vand.u32 2147483647, %v3230_v43 }
 0x5db   :  { %2046 = vpow2.f32 %v1847_v54  ;;  %v1685_v49 = vor.u32 1.1754944e-38, %v1684_v19  ;;  %vm1683_vm4 = vcmp.eq.f32.partialorder %v1682_v35, 8.507059e+37 }
 0x5dc   :  { %v1700_v23 = vor.u32 1.1754944e-38, %v1699_v58  ;;  %vm1698_vm11 = vcmp.eq.f32.partialorder %v1697_v1, 8.507059e+37 }
 0x5de   :  { %v2041_v39 = vpop.eup %2040 }
 0x5df   :  { %v2043_v52 = vpop.eup %2042  ;;  %v3233_v30 = vadd.f32 1.0, %v2041_v39 }
 0x5e0   :  { %v3235_v40 = vpop.eup %2044  ;;  %v1674_v20 = vmul.f32 %v2043_v52, %v1669_v8  ;;  %vm1679_vm1 = vweird.f32 %v2043_v52 }
 0x5e1   :  { %v2047_v45 = vpop.eup %2046  ;;  %v1689_v2 = vmul.f32 %v3235_v40, %v3230_v43  ;;  %2048 = vrcp.f32 %v3233_v30  ;;  %vm1680_vm3 = vmor %vm1678_vm2, %vm1679_vm1  ;;  %vm1694_vm5 = vweird.f32 %v3235_v40  ;;  %v1714_v44 = vand.u32 2147483648, %v3233_v30 }
 0x5e2   :  { %v1675_v32 = vsub.f32 1.0, %v1674_v20  ;;  %v3240_v21 = vadd.f32 1.0, %v2047_v45  ;;  %v1712_v48 = vand.u32 2147483647, %v3233_v30  ;;  %vm3259_vm8 = vmor %vm1693_vm6, %vm1694_vm5  ;;  %vm1708_vm9 = vweird.f32 %v3233_v30 }
 0x5e3   :  { %v1690_v9 = vsub.f32 1.0, %v1689_v2  ;;  %v1715_v55 = vor.u32 1.1754944e-38, %v1714_v44 }
 0x5e4   :  { %v1676_v28 = vmul.f32 %v2043_v52, %v1675_v32  ;;  %2050 = vrcp.f32 %v3240_v21  ;;  %vm1713_vm12 = vcmp.eq.f32.partialorder %v1712_v48, 8.507059e+37  ;;  %v1729_v8 = vand.u32 2147483648, %v3240_v21 }
 0x5e5   :  { %v1691_v59 = vmul.f32 %v3235_v40, %v1690_v9  ;;  %vm1723_vm14 = vweird.f32 %v3240_v21  ;;  %v1727_v62 = vand.u32 2147483647, %v3240_v21 }
 0x5e6   :  { %v1677_v11 = vadd.f32 %v2043_v52, %v1676_v28 }
 0x5e7   :  { %v2049_v7 = vpop.eup %2048  ;;  %v1692_v47 = vadd.f32 %v3235_v40, %v1691_v59  ;;  %vm1728_vm0 = vcmp.eq.f32.partialorder %v1727_v62, 8.507059e+37 }
 0x5e8   :  { %v1681_v17 = vsel %vm1680_vm3, %v2043_v52, %v1677_v11  ;;  %v1704_v51 = vmul.f32 %v2049_v7, %v3233_v30  ;;  %vm1709_vm7 = vweird.f32 %v2049_v7  ;;  %v1730_v30 = vor.u32 1.1754944e-38, %v1729_v8 }
 0x5e9   :  { %v1686_v41 = vsel %vm1683_vm4, %v1685_v49, %v1681_v17  ;;  %v1696_v53 = vsel %vm3259_vm8, %v3235_v40, %v1692_v47  ;;  %vm1710_vm10 = vmor %vm1708_vm9, %vm1709_vm7 }
 0x5ea   :  { %v2051_v4 = vpop.eup %2050  ;;  %v1705_v63 = vsub.f32 1.0, %v1704_v51  ;;  %v1735_v61 = vmul.f32 %v1733_v6, %v1686_v41  ;;  %v1701_v0 = vsel %vm1698_vm11, %v1700_v23, %v1696_v53 }
 0x5eb   :  { %v1719_v5 = vmul.f32 %v2051_v4, %v3240_v21  ;;  %vm1724_vm13 = vweird.f32 %v2051_v4  ;;  %v1741_v43 = vsub.f32 1.0, %v1701_v0  ;;  %v1745_v10 = vmul.f32 %v1701_v0, %v3203_v36  ;;  %v1895_v21 = vld [vmem:[%s3291_s7] ss:$0 sm:$0xff] }
 0x5ec   :  { %v1706_v15 = vmul.f32 %v2049_v7, %v1705_v63  ;;  %v1737_v18 = vadd.f32 %v1735_v61, %v318_v60  ;;  %vm1725_vm15 = vmor %vm1723_vm14, %vm1724_vm13 }
 0x5ed   :  { %v1720_v34 = vsub.f32 1.0, %v1719_v5 }
 0x5ee   :  { %v1707_v56 = vadd.f32 %v2049_v7, %v1706_v15  ;;  %2052 = vtanh.f32 %v1737_v18 }
 0x5ef   :  { %v1721_v13 = vmul.f32 %v2051_v4, %v1720_v34 }
 0x5f0   :  { %v1711_v46 = vsel %vm1710_vm10, %v2049_v7, %v1707_v56 }
 0x5f1   :  { %v1716_v29 = vsel %vm1713_vm12, %v1715_v55, %v1711_v46  ;;  %v1722_v24 = vadd.f32 %v2051_v4, %v1721_v13 }
 0x5f2   :  { %v1736_v54 = vmul.f32 %v1734_v27, %v1716_v29 }
 0x5f3   :  { %v1726_v52 = vsel %vm1725_vm15, %v2051_v4, %v1722_v24 }
 0x5f4   :  { %v2053_v3 = vpop.eup %2052  ;;  %v1738_v16 = vadd.f32 %v1736_v54, %v321_v33  ;;  %v1731_v57 = vsel %vm1728_vm0, %v1730_v30, %v1726_v52 }
 0x5f5   :  { %v1743_v39 = vmul.f32 %v2053_v3, %v1741_v43  ;;  %v1742_v20 = vsub.f32 1.0, %v1731_v57  ;;  %v1746_v2 = vmul.f32 %v1731_v57, %v3209_v14 }
 0x5f6   :  { %2054 = vtanh.f32 %v1738_v16 }
 0x5f7   :  { %v1747_v40 = vadd.f32 %v1745_v10, %v1743_v39 }
 0x5f9   :  { %1785 = vmatmul.f32.vlgmr.msra.gmra.mxu1 %v1747_v40 }
 0x5fc   :  { %v2055_v38 = vpop.eup %2054 }
 0x5fd   :  { %v1744_v45 = vmul.f32 %v2055_v38, %v1742_v20 }
 0x5ff   :  { %v1748_v32 = vadd.f32 %v1746_v2, %v1744_v45 }
 0x601   :  { %1788 = vmatmul.f32.vlgmr.msra.gmra.mxu2 %v1748_v32 }
 0x676   :  { %v1786_v26 = vpop.f32.mrf.mxu1 }
 0x677   :  { %v1787_v36 = vadd.f32 %v1895_v21, %v1786_v26 }
 0x679   :  { %1792 = vst [vmem:[#allocation8] sm:$0xff] %v1787_v36 }
 0x684   :  { %v1789_v12 = vpop.f32.mrf.mxu2 }
 0x685   :  { %v1790_v19 = vadd.f32 %v1895_v21, %v1789_v12 }
 0x687   :  { %1793 = vst [vmem:[#allocation8 + $0x8] sm:$0xff] %v1790_v19 }
 0x688   :  { %1806 = dma.vmem_to_hbm [thread:$0]  %s1799_s11, 256, %s1801_s14, [#allocation5], %s2191_s17, %s2191_s17, %s2192_s18  }
 0x689   :  { %2185 = dma.done.wait [#allocation5], 256  }
 0x68a   :  { %2186 = vsyncadd [#allocation5], 4294967040 }
 0x68b   :  { %1811 = vsyncpa [#allocation4], 1 }
 0x68c   :  { %1812 = vsyncpa [#allocation7], 1 }
 0x68d   :  { %1813 = vsyncpa [#allocation5], 1 }

</bundles_post_ra>
